<compile_context>
chip_gen: v6e
topology: v6e:2x2x1
jax: 0.10.0
libtpu: 0.0.40
codegen_flags: <defaults>
</compile_context>

<pallas_src>
import functools
import math

import jax
import jax.numpy as jnp
from jax import lax
from jax.experimental import pallas as pl
from jax.experimental.pallas import tpu as pltpu

EPS = 1e-6
NEG_INF = -1e9


def _layer_norm(x, a, b):
    # Matches annotated-transformer LayerNorm: unbiased std (Bessel /(d-1)),
    # eps added to std (not variance).  Exact division here (approx reciprocal
    # error would compound over the layer stack).
    d = x.shape[-1]
    mean = jnp.mean(x, axis=-1, keepdims=True)
    var = jnp.sum((x - mean) ** 2, axis=-1, keepdims=True) * (1.0 / (d - 1))
    return a * (x - mean) / (jnp.sqrt(var) + EPS) + b


def encoder_kernel(x_ref, mask_ref,
                   ln1_a_ref, ln1_b_ref,
                   wq_ref, bq_ref, wk_ref, bk_ref, wv_ref, bv_ref,
                   wo_ref, bo_ref,
                   ln2_a_ref, ln2_b_ref,
                   w1_ref, b1_ref, w2_ref, b2_ref,
                   fn_a_ref, fn_b_ref,
                   o_ref,
                   *, num_heads, seq_len, key_chunk, compute_dtype):
    layer = pl.program_id(1)
    n_layers = pl.num_programs(1)

    # The output block is resident across the layer axis (its index map ignores
    # `l`), so it doubles as the activation accumulator: no extra scratch and
    # no per-layer HBM writeback of the activation.
    @pl.when(layer == 0)
    def _():
        o_ref[...] = x_ref[...]

    x = o_ref[...]                                   # (M, D) f32, M = Bt * S
    M, D = x.shape
    S = seq_len
    Bt = M // S
    H = num_heads
    d_k = D // H
    scale = 1.0 / math.sqrt(d_k)

    def mm(a, b):                                    # MXU matmul, f32 accumulate
        return jnp.dot(a, b, preferred_element_type=jnp.float32)

    # ----- sublayer 0: x + self_attn(LayerNorm(x)) -----
    y = _layer_norm(x, ln1_a_ref[0], ln1_b_ref[0])
    yc = y.astype(compute_dtype)                     # cast once for Q/K/V matmuls
    # Fused full-width projections over the whole batch tile: (Bt*S, D)x(D, D).
    q_all = (mm(yc, wq_ref[0]) + bq_ref[0]).astype(compute_dtype)
    k_all = (mm(yc, wk_ref[0]) + bk_ref[0]).astype(compute_dtype)
    v_all = (mm(yc, wv_ref[0]) + bv_ref[0]).astype(compute_dtype)

    kc = min(key_chunk, S)
    # TODO(synk): for very large S additionally tile the query dim; the
    # key-chunked online softmax below already bounds live score temporaries
    # to (S, key_chunk) per head.
    # TODO(synk): a head-batched (H, S, d_k) layout would improve MXU fill when
    # d_k < 128; heads are processed one at a time here.
    ctx_rows = []
    for bi in range(Bt):                             # static loops (small trip counts)
        q_b = q_all[bi * S:(bi + 1) * S, :]          # (S, D)
        k_b = k_all[bi * S:(bi + 1) * S, :]
        v_b = v_all[bi * S:(bi + 1) * S, :]
        # Additive key mask, hoisted out of the head / chunk loops: (1, S).
        amask = jnp.where(mask_ref[bi] > 0, 0.0, NEG_INF)
        head_outs = []
        for h in range(H):
            qh = q_b[:, h * d_k:(h + 1) * d_k]       # (S, d_k)
            kh = k_b[:, h * d_k:(h + 1) * d_k]
            vh = v_b[:, h * d_k:(h + 1) * d_k]
            m_run = jnp.full((S, 1), -jnp.inf, jnp.float32)
            l_run = jnp.zeros((S, 1), jnp.float32)
            acc = jnp.zeros((S, d_k), jnp.float32)
            for c0 in range(0, S, kc):               # online softmax over key chunks
                c1 = min(c0 + kc, S)
                # Contract last dims directly (no materialized K transpose).
                sc = lax.dot_general(
                    qh, kh[c0:c1, :],
                    dimension_numbers=(((1,), (1,)), ((), ())),
                    preferred_element_type=jnp.float32) * scale
                sc = sc + amask[:, c0:c1]
                m_new = jnp.maximum(m_run, jnp.max(sc, axis=-1, keepdims=True))
                alpha = jnp.exp(m_run - m_new)
                p = jnp.exp(sc - m_new)
                l_run = alpha * l_run + jnp.sum(p, axis=-1, keepdims=True)
                acc = alpha * acc + mm(p.astype(compute_dtype), vh[c0:c1, :])
                m_run = m_new
            head_outs.append(acc * pl.reciprocal(l_run, approx=True))
        ctx_rows.append(jnp.concatenate(head_outs, axis=-1))    # (S, D)
    ctx = jnp.concatenate(ctx_rows, axis=0)                     # (M, D)

    attn_out = mm(ctx.astype(compute_dtype), wo_ref[0]) + bo_ref[0]
    x = x + attn_out
    # TODO(synk): dropout in SublayerConnection / attention / FFN is identity (eval mode).

    # ----- sublayer 1: x + FFN(LayerNorm(x)) -----
    y = _layer_norm(x, ln2_a_ref[0], ln2_b_ref[0])
    hdn = jnp.maximum(mm(y.astype(compute_dtype), w1_ref[0]) + b1_ref[0], 0.0)
    x = x + mm(hdn.astype(compute_dtype), w2_ref[0]) + b2_ref[0]

    o_ref[...] = x

    # Final Encoder LayerNorm folded into the last layer iteration.
    @pl.when(layer == n_layers - 1)
    def _():
        o_ref[...] = _layer_norm(x, fn_a_ref[...], fn_b_ref[...])


def _pick_vmem_limit_bytes():
    """Per-generation VMEM budget: ~3/4 of physical, capped at 96 MiB.
    v5e/v6e (128 MiB physical) -> 96 MiB; v7x (64 MiB physical) -> 48 MiB."""
    cap = 128 * 1024 * 1024
    try:
        info = pltpu.get_tpu_info()
        cap = int(getattr(info, "vmem_capacity_bytes", cap))
    except Exception:
        pass
    return int(min(96 * 1024 * 1024, (cap * 3) // 4))


def encoder_forward(x, mask, layers, norm_a, norm_b, num_heads,
                    compute_dtype=jnp.float32, batch_tile=None, key_chunk=512):
    """Fused Encoder forward: one pallas_call over grid (batch_tiles, n_layers)."""
    B, S, D = x.shape
    H = num_heads
    d_k = D // H
    N = len(layers)
    d_ff = layers[0]["w1"].shape[-1]

    Bt = B if batch_tile is None else batch_tile
    assert B % Bt == 0, "batch must divide evenly into batch tiles"
    n_btiles = B // Bt
    M = Bt * S  # rows per batch tile (keep S a multiple of 8 for clean tiling)

    # encoder_mask(mask): (B, S) -> (B, 1, S); broadcasts over query positions.
    mask3 = mask[:, None, :].astype(jnp.float32)
    # Flatten (B, S, D) -> (B*S, D): batch-tiled rows give the projections/FFN
    # an MXU M-dim of Bt*S and let each layer's weights be fetched once per
    # batch TILE instead of once per batch element.
    x2 = x.reshape(B * S, D).astype(jnp.float32)

    wdt = compute_dtype  # pre-cast weights in HBM: halves weight DMA on bf16 path
    stack = lambda name: jnp.stack([p[name] for p in layers], axis=0)
    # Fuse per-head projection weights into full-width (D, D) matrices.
    wq = jnp.stack([p["wq"].transpose(1, 0, 2).reshape(D, H * d_k)
                    for p in layers]).astype(wdt)
    wk = jnp.stack([p["wk"].transpose(1, 0, 2).reshape(D, H * d_k)
                    for p in layers]).astype(wdt)
    wv = jnp.stack([p["wv"].transpose(1, 0, 2).reshape(D, H * d_k)
                    for p in layers]).astype(wdt)
    bq = jnp.stack([p["bq"].reshape(1, H * d_k) for p in layers])
    bk = jnp.stack([p["bk"].reshape(1, H * d_k) for p in layers])
    bv = jnp.stack([p["bv"].reshape(1, H * d_k) for p in layers])
    wo = jnp.stack([p["wo"].reshape(H * d_k, D) for p in layers]).astype(wdt)
    bo = stack("bo")
    ln1_a, ln1_b = stack("ln1_a"), stack("ln1_b")
    ln2_a, ln2_b = stack("ln2_a"), stack("ln2_b")
    w1, b1 = stack("w1").astype(wdt), stack("b1")
    w2, b2 = stack("w2").astype(wdt), stack("b2")

    def per_layer(shp):
        return pl.BlockSpec((1,) + shp, lambda b, l, _n=len(shp): (l,) + (0,) * _n)

    def const(shp):
        return pl.BlockSpec(shp, lambda b, l, _n=len(shp): (0,) * _n)

    grid_spec = pltpu.PrefetchScalarGridSpec(
        num_scalar_prefetch=0,
        grid=(n_btiles, N),
        in_specs=[
            pl.BlockSpec((M, D), lambda b, l: (b, 0)),         # x (per batch tile)
            pl.BlockSpec((Bt, 1, S), lambda b, l: (b, 0, 0)),  # mask
            per_layer((1, D)), per_layer((1, D)),              # ln1 a/b
            per_layer((D, D)), per_layer((1, D)),              # Wq, bq
            per_layer((D, D)), per_layer((1, D)),              # Wk, bk
            per_layer((D, D)), per_layer((1, D)),              # Wv, bv
            per_layer((D, D)), per_layer((1, D)),              # Wo, bo
            per_layer((1, D)), per_layer((1, D)),              # ln2 a/b
            per_layer((D, d_ff)), per_layer((1, d_ff)),        # W1, b1
            per_layer((d_ff, D)), per_layer((1, D)),           # W2, b2
            const((1, D)), const((1, D)),                      # final norm a/b
        ],
        out_specs=pl.BlockSpec((M, D), lambda b, l: (b, 0)),
    )
    # TODO(synk): if weight DMA is still exposed on v5e/v6e after bf16 weights,
    # add pipeline_mode=pl.Buffered(3) on the W1/W2 specs (not on v7x).
    out = pl.pallas_call(
        functools.partial(encoder_kernel, num_heads=H, seq_len=S,
                          key_chunk=key_chunk, compute_dtype=compute_dtype),
        out_shape=jax.ShapeDtypeStruct((B * S, D), jnp.float32),
        grid_spec=grid_spec,
        compiler_params=pltpu.CompilerParams(
            dimension_semantics=("parallel", "arbitrary"),
            vmem_limit_bytes=_pick_vmem_limit_bytes()),
    )(x2, mask3,
      ln1_a, ln1_b, wq, bq, wk, bk, wv, bv, wo, bo,
      ln2_a, ln2_b, w1, b1, w2, b2, norm_a, norm_b)
    return out.reshape(B, S, D)


# ------------------------- deterministic parameter init -------------------------

def init_layer_params(key, D, H, d_ff):
    d_k = D // H
    ks = jax.random.split(key, 12)
    s = 0.1
    n = lambda k, shp: (jax.random.normal(k, shp, jnp.float32) * s)
    return {
        "ln1_a": jnp.ones((1, D), jnp.float32),
        "ln1_b": jnp.zeros((1, D), jnp.float32),
        "wq": n(ks[0], (H, D, d_k)), "bq": n(ks[1], (H, 1, d_k)),
        "wk": n(ks[2], (H, D, d_k)), "bk": n(ks[3], (H, 1, d_k)),
        "wv": n(ks[4], (H, D, d_k)), "bv": n(ks[5], (H, 1, d_k)),
        "wo": n(ks[6], (H, d_k, D)), "bo": n(ks[7], (1, D)),
        "ln2_a": jnp.ones((1, D), jnp.float32),
        "ln2_b": jnp.zeros((1, D), jnp.float32),
        "w1": n(ks[8], (D, d_ff)), "b1": n(ks[9], (1, d_ff)),
        "w2": n(ks[10], (d_ff, D)), "b2": n(ks[11], (1, D)),
    }


# ------------------------------ pure-JAX reference ------------------------------

def _ref_layer_norm(x, a, b):
    d = x.shape[-1]
    mean = jnp.mean(x, axis=-1, keepdims=True)
    var = jnp.sum((x - mean) ** 2, axis=-1, keepdims=True) / (d - 1)
    return a * (x - mean) / (jnp.sqrt(var) + EPS) + b


def reference_encoder(x, mask, layers, norm_a, norm_b, H):
    m = mask[:, None, None, :]  # (B,1,1,S)
    for p in layers:
        y = _ref_layer_norm(x, p["ln1_a"], p["ln1_b"])
        q = jnp.einsum("bsd,hdk->bhsk", y, p["wq"]) + p["bq"][None]
        k = jnp.einsum("bsd,hdk->bhsk", y, p["wk"]) + p["bk"][None]
        v = jnp.einsum("bsd,hdk->bhsk", y, p["wv"]) + p["bv"][None]
        d_k = q.shape[-1]
        sc = jnp.einsum("bhqd,bhkd->bhqk", q, k) / jnp.sqrt(jnp.float32(d_k))
        sc = jnp.where(m > 0, sc, NEG_INF)
        pr = jax.nn.softmax(sc, axis=-1)
        ctx = jnp.einsum("bhqk,bhkd->bhqd", pr, v)
        attn = jnp.einsum("bhqd,hde->bqe", ctx, p["wo"]) + p["bo"]
        x = x + attn
        y = _ref_layer_norm(x, p["ln2_a"], p["ln2_b"])
        ff = jnp.maximum(y @ p["w1"] + p["b1"], 0.0) @ p["w2"] + p["b2"]
        x = x + ff
    return _ref_layer_norm(x, norm_a, norm_b)


if __name__ == "__main__":
    B, S, D, H, d_ff, N = 2, 8, 32, 4, 64, 2

    key = jax.random.PRNGKey(0)
    kx, kp = jax.random.split(key, 2)
    x = jax.random.normal(kx, (B, S, D), jnp.float32)
    # src mask: 1 = real token, 0 = padding (pad last 2 tokens of batch 1).
    mask = jnp.ones((B, S), jnp.float32).at[1, 6:].set(0.0)

    layer_keys = jax.random.split(kp, N)
    layers = [init_layer_params(k, D, H, d_ff) for k in layer_keys]
    norm_a = jnp.ones((1, D), jnp.float32)
    norm_b = jnp.zeros((1, D), jnp.float32)

    # f32 compute path for the strict correctness gate; pass
    # compute_dtype=jnp.bfloat16 for max MXU throughput on v5e/v6e/v7x.
    out = jax.block_until_ready(
        encoder_forward(x, mask, layers, norm_a, norm_b, H,
                        compute_dtype=jnp.float32))

    with jax.default_matmul_precision("highest"):
        ref = jax.block_until_ready(
            reference_encoder(x, mask, layers, norm_a, norm_b, H))
    max_err = float(jnp.max(jnp.abs(out - ref)))
    assert max_err < 2e-2, f"mismatch vs reference: {max_err}"

    print("KERNEL_OK")
</pallas_src>

<mosaic_0001>
module attributes {stable_mosaic.version = 11 : i64} {
  func.func @encoder_kernel(%arg0: i32, %arg1: i32, %arg2: memref<16x32xf32, #tpu.memory_space<vmem>>, %arg3: memref<2x1x8xf32, #tpu.memory_space<vmem>>, %arg4: memref<1x1x32xf32, #tpu.memory_space<vmem>>, %arg5: memref<1x1x32xf32, #tpu.memory_space<vmem>>, %arg6: memref<1x32x32xf32, #tpu.memory_space<vmem>>, %arg7: memref<1x1x32xf32, #tpu.memory_space<vmem>>, %arg8: memref<1x32x32xf32, #tpu.memory_space<vmem>>, %arg9: memref<1x1x32xf32, #tpu.memory_space<vmem>>, %arg10: memref<1x32x32xf32, #tpu.memory_space<vmem>>, %arg11: memref<1x1x32xf32, #tpu.memory_space<vmem>>, %arg12: memref<1x32x32xf32, #tpu.memory_space<vmem>>, %arg13: memref<1x1x32xf32, #tpu.memory_space<vmem>>, %arg14: memref<1x1x32xf32, #tpu.memory_space<vmem>>, %arg15: memref<1x1x32xf32, #tpu.memory_space<vmem>>, %arg16: memref<1x32x64xf32, #tpu.memory_space<vmem>>, %arg17: memref<1x1x64xf32, #tpu.memory_space<vmem>>, %arg18: memref<1x64x32xf32, #tpu.memory_space<vmem>>, %arg19: memref<1x1x32xf32, #tpu.memory_space<vmem>>, %arg20: memref<1x32xf32, #tpu.memory_space<vmem>>, %arg21: memref<1x32xf32, #tpu.memory_space<vmem>>, %arg22: memref<16x32xf32, #tpu.memory_space<vmem>>) attributes {dimension_semantics = [#tpu.dimension_semantics<parallel>, #tpu.dimension_semantics<arbitrary>], iteration_bounds = array<i64: 1, 2>, scalar_prefetch = 0 : i64, scratch_operands = 0 : i64, tpu.core_type = #tpu.core_type<tc>, window_params = [{transform_indices = @transform_0, window_bounds = array<i64: 16, 32>}, {transform_indices = @transform_1, window_bounds = array<i64: 2, 1, 8>}, {transform_indices = @transform_2, window_bounds = array<i64: 1, 1, 32>}, {transform_indices = @transform_3, window_bounds = array<i64: 1, 1, 32>}, {transform_indices = @transform_4, window_bounds = array<i64: 1, 32, 32>}, {transform_indices = @transform_5, window_bounds = array<i64: 1, 1, 32>}, {transform_indices = @transform_6, window_bounds = array<i64: 1, 32, 32>}, {transform_indices = @transform_7, window_bounds = array<i64: 1, 1, 32>}, {transform_indices = @transform_8, window_bounds = array<i64: 1, 32, 32>}, {transform_indices = @transform_9, window_bounds = array<i64: 1, 1, 32>}, {transform_indices = @transform_10, window_bounds = array<i64: 1, 32, 32>}, {transform_indices = @transform_11, window_bounds = array<i64: 1, 1, 32>}, {transform_indices = @transform_12, window_bounds = array<i64: 1, 1, 32>}, {transform_indices = @transform_13, window_bounds = array<i64: 1, 1, 32>}, {transform_indices = @transform_14, window_bounds = array<i64: 1, 32, 64>}, {transform_indices = @transform_15, window_bounds = array<i64: 1, 1, 64>}, {transform_indices = @transform_16, window_bounds = array<i64: 1, 64, 32>}, {transform_indices = @transform_17, window_bounds = array<i64: 1, 1, 32>}, {pipeline_mode = #tpu.pipeline_mode<synchronous>, transform_indices = @transform_18, window_bounds = array<i64: 1, 32>}, {pipeline_mode = #tpu.pipeline_mode<synchronous>, transform_indices = @transform_19, window_bounds = array<i64: 1, 32>}, {transform_indices = @transform_20, window_bounds = array<i64: 16, 32>}]} {
    %c0_i32 = arith.constant 0 : i32
    %0 = arith.cmpi eq, %arg1, %c0_i32 : i32
    %1 = arith.extui %0 : i1 to i32
    %c0_i32_0 = arith.constant 0 : i32
    %2 = arith.cmpi ne, %1, %c0_i32_0 : i32
    scf.if %2 {
      %c0_144 = arith.constant 0 : index
      %c0_145 = arith.constant 0 : index
      %369 = vector.load %arg2[%c0_144, %c0_145] : memref<16x32xf32, #tpu.memory_space<vmem>>, vector<16x32xf32>
      %c0_146 = arith.constant 0 : index
      %c0_147 = arith.constant 0 : index
      %370 = vector.load %arg22[%c0_146, %c0_147] : memref<16x32xf32, #tpu.memory_space<vmem>>, vector<16x32xf32>
      tpu.vector_store %arg22[%c0_146, %c0_147], %369 {strides = array<i32>} : memref<16x32xf32, #tpu.memory_space<vmem>>, vector<16x32xf32>,
    } else {
    }
    %c0 = arith.constant 0 : index
    %c0_1 = arith.constant 0 : index
    %3 = vector.load %arg22[%c0, %c0_1] : memref<16x32xf32, #tpu.memory_space<vmem>>, vector<16x32xf32>
    %c0_2 = arith.constant 0 : index
    %c0_3 = arith.constant 0 : index
    %c0_4 = arith.constant 0 : index
    %4 = vector.load %arg4[%c0_2, %c0_3, %c0_4] : memref<1x1x32xf32, #tpu.memory_space<vmem>>, vector<1x1x32xf32>
    %5 = vector.shape_cast %4 : vector<1x1x32xf32> to vector<1x32xf32>
    %c0_5 = arith.constant 0 : index
    %c0_6 = arith.constant 0 : index
    %c0_7 = arith.constant 0 : index
    %6 = vector.load %arg5[%c0_5, %c0_6, %c0_7] : memref<1x1x32xf32, #tpu.memory_space<vmem>>, vector<1x1x32xf32>
    %7 = vector.shape_cast %6 : vector<1x1x32xf32> to vector<1x32xf32>
    %cst = arith.constant dense<0.000000e+00> : vector<16xf32>
    %8 = vector.multi_reduction <add>, %3, %cst [1] : vector<16x32xf32> to vector<16xf32>
    %9 = vector.shape_cast %8 : vector<16xf32> to vector<16x1xf32>
    %cst_8 = arith.constant 3.200000e+01 : f32
    %10 = vector.broadcast %cst_8 : f32 to vector<16x1xf32>
    %11 = arith.divf %9, %10 : vector<16x1xf32>
    %12 = vector.broadcast %11 : vector<16x1xf32> to vector<16x32xf32>
    %13 = arith.subf %3, %12 : vector<16x32xf32>
    %14 = arith.mulf %13, %13 : vector<16x32xf32>
    %cst_9 = arith.constant dense<0.000000e+00> : vector<16xf32>
    %15 = vector.multi_reduction <add>, %14, %cst_9 [1] : vector<16x32xf32> to vector<16xf32>
    %16 = vector.shape_cast %15 : vector<16xf32> to vector<16x1xf32>
    %cst_10 = arith.constant 0.0322580636 : f32
    %17 = vector.broadcast %cst_10 : f32 to vector<16x1xf32>
    %18 = arith.mulf %16, %17 : vector<16x1xf32>
    %19 = vector.broadcast %11 : vector<16x1xf32> to vector<16x32xf32>
    %20 = arith.subf %3, %19 : vector<16x32xf32>
    %21 = vector.broadcast %5 : vector<1x32xf32> to vector<16x32xf32>
    %22 = arith.mulf %21, %20 : vector<16x32xf32>
    %23 = math.sqrt %18 : vector<16x1xf32>
    %cst_11 = arith.constant 9.99999997E-7 : f32
    %24 = vector.broadcast %cst_11 : f32 to vector<16x1xf32>
    %25 = arith.addf %23, %24 : vector<16x1xf32>
    %26 = vector.broadcast %25 : vector<16x1xf32> to vector<16x32xf32>
    %27 = arith.divf %22, %26 : vector<16x32xf32>
    %28 = vector.broadcast %7 : vector<1x32xf32> to vector<16x32xf32>
    %29 = arith.addf %27, %28 : vector<16x32xf32>
    %c0_12 = arith.constant 0 : index
    %c0_13 = arith.constant 0 : index
    %c0_14 = arith.constant 0 : index
    %30 = vector.load %arg6[%c0_12, %c0_13, %c0_14] : memref<1x32x32xf32, #tpu.memory_space<vmem>>, vector<1x32x32xf32>
    %31 = vector.shape_cast %30 : vector<1x32x32xf32> to vector<32x32xf32>
    %cst_15 = arith.constant dense<0.000000e+00> : vector<16x32xf32>
    %32 = tpu.matmul %29, %31, %cst_15 {dimension_numbers = #tpu.dot_dimension_numbers<[1], [0], [0], [1], [0, 0, 1, 1], [], []>} : vector<16x32xf32>, vector<32x32xf32>, vector<16x32xf32> -> vector<16x32xf32>
    %c0_16 = arith.constant 0 : index
    %c0_17 = arith.constant 0 : index
    %c0_18 = arith.constant 0 : index
    %33 = vector.load %arg7[%c0_16, %c0_17, %c0_18] : memref<1x1x32xf32, #tpu.memory_space<vmem>>, vector<1x1x32xf32>
    %34 = vector.shape_cast %33 : vector<1x1x32xf32> to vector<1x32xf32>
    %35 = vector.broadcast %34 : vector<1x32xf32> to vector<16x32xf32>
    %36 = arith.addf %32, %35 : vector<16x32xf32>
    %c0_19 = arith.constant 0 : index
    %c0_20 = arith.constant 0 : index
    %c0_21 = arith.constant 0 : index
    %37 = vector.load %arg8[%c0_19, %c0_20, %c0_21] : memref<1x32x32xf32, #tpu.memory_space<vmem>>, vector<1x32x32xf32>
    %38 = vector.shape_cast %37 : vector<1x32x32xf32> to vector<32x32xf32>
    %cst_22 = arith.constant dense<0.000000e+00> : vector<16x32xf32>
    %39 = tpu.matmul %29, %38, %cst_22 {dimension_numbers = #tpu.dot_dimension_numbers<[1], [0], [0], [1], [0, 0, 1, 1], [], []>} : vector<16x32xf32>, vector<32x32xf32>, vector<16x32xf32> -> vector<16x32xf32>
    %c0_23 = arith.constant 0 : index
    %c0_24 = arith.constant 0 : index
    %c0_25 = arith.constant 0 : index
    %40 = vector.load %arg9[%c0_23, %c0_24, %c0_25] : memref<1x1x32xf32, #tpu.memory_space<vmem>>, vector<1x1x32xf32>
    %41 = vector.shape_cast %40 : vector<1x1x32xf32> to vector<1x32xf32>
    %42 = vector.broadcast %41 : vector<1x32xf32> to vector<16x32xf32>
    %43 = arith.addf %39, %42 : vector<16x32xf32>
    %c0_26 = arith.constant 0 : index
    %c0_27 = arith.constant 0 : index
    %c0_28 = arith.constant 0 : index
    %44 = vector.load %arg10[%c0_26, %c0_27, %c0_28] : memref<1x32x32xf32, #tpu.memory_space<vmem>>, vector<1x32x32xf32>
    %45 = vector.shape_cast %44 : vector<1x32x32xf32> to vector<32x32xf32>
    %cst_29 = arith.constant dense<0.000000e+00> : vector<16x32xf32>
    %46 = tpu.matmul %29, %45, %cst_29 {dimension_numbers = #tpu.dot_dimension_numbers<[1], [0], [0], [1], [0, 0, 1, 1], [], []>} : vector<16x32xf32>, vector<32x32xf32>, vector<16x32xf32> -> vector<16x32xf32>
    %c0_30 = arith.constant 0 : index
    %c0_31 = arith.constant 0 : index
    %c0_32 = arith.constant 0 : index
    %47 = vector.load %arg11[%c0_30, %c0_31, %c0_32] : memref<1x1x32xf32, #tpu.memory_space<vmem>>, vector<1x1x32xf32>
    %48 = vector.shape_cast %47 : vector<1x1x32xf32> to vector<1x32xf32>
    %49 = vector.broadcast %48 : vector<1x32xf32> to vector<16x32xf32>
    %50 = arith.addf %46, %49 : vector<16x32xf32>
    %51 = vector.extract_strided_slice %36 {offsets = [0, 0], sizes = [8, 32], strides = [1, 1]} : vector<16x32xf32> to vector<8x32xf32>
    %52 = vector.extract_strided_slice %43 {offsets = [0, 0], sizes = [8, 32], strides = [1, 1]} : vector<16x32xf32> to vector<8x32xf32>
    %53 = vector.extract_strided_slice %50 {offsets = [0, 0], sizes = [8, 32], strides = [1, 1]} : vector<16x32xf32> to vector<8x32xf32>
    %c0_33 = arith.constant 0 : index
    %c0_34 = arith.constant 0 : index
    %c0_35 = arith.constant 0 : index
    %54 = vector.load %arg3[%c0_33, %c0_34, %c0_35] : memref<2x1x8xf32, #tpu.memory_space<vmem>>, vector<1x1x8xf32>
    %55 = vector.shape_cast %54 : vector<1x1x8xf32> to vector<1x8xf32>
    %cst_36 = arith.constant 0.000000e+00 : f32
    %56 = vector.broadcast %cst_36 : f32 to vector<1x8xf32>
    %57 = arith.cmpf ogt, %55, %56 : vector<1x8xf32>
    %cst_37 = arith.constant 0.000000e+00 : f32
    %cst_38 = arith.constant -1.000000e+09 : f32
    %58 = vector.broadcast %cst_37 : f32 to vector<1x8xf32>
    %59 = vector.broadcast %cst_38 : f32 to vector<1x8xf32>
    %60 = arith.select %57, %58, %59 : vector<1x8xi1>, vector<1x8xf32>
    %61 = vector.extract_strided_slice %51 {offsets = [0, 0], sizes = [8, 8], strides = [1, 1]} : vector<8x32xf32> to vector<8x8xf32>
    %62 = vector.extract_strided_slice %52 {offsets = [0, 0], sizes = [8, 8], strides = [1, 1]} : vector<8x32xf32> to vector<8x8xf32>
    %63 = vector.extract_strided_slice %53 {offsets = [0, 0], sizes = [8, 8], strides = [1, 1]} : vector<8x32xf32> to vector<8x8xf32>
    %cst_39 = arith.constant 0xFF800000 : f32
    %64 = vector.broadcast %cst_39 : f32 to vector<8x1xf32>
    %cst_40 = arith.constant 0.000000e+00 : f32
    %65 = vector.broadcast %cst_40 : f32 to vector<8x1xf32>
    %cst_41 = arith.constant 0.000000e+00 : f32
    %66 = vector.broadcast %cst_41 : f32 to vector<8x8xf32>
    %cst_42 = arith.constant dense<0.000000e+00> : vector<8x8xf32>
    %67 = tpu.matmul %61, %62, %cst_42 {dimension_numbers = #tpu.dot_dimension_numbers<[1], [1], [0], [0], [0, 0, 1, 0], [], []>} : vector<8x8xf32>, vector<8x8xf32>, vector<8x8xf32> -> vector<8x8xf32>
    %cst_43 = arith.constant 0.353553385 : f32
    %68 = vector.broadcast %cst_43 : f32 to vector<8x8xf32>
    %69 = arith.mulf %67, %68 : vector<8x8xf32>
    %70 = vector.broadcast %60 : vector<1x8xf32> to vector<8x8xf32>
    %71 = arith.addf %69, %70 : vector<8x8xf32>
    %cst_44 = arith.constant dense<0xFF800000> : vector<8xf32>
    %72 = vector.multi_reduction <maximumf>, %71, %cst_44 [1] : vector<8x8xf32> to vector<8xf32>
    %73 = vector.shape_cast %72 : vector<8xf32> to vector<8x1xf32>
    %74 = arith.maximumf %64, %73 : vector<8x1xf32>
    %75 = arith.subf %64, %74 : vector<8x1xf32>
    %76 = math.exp %75 : vector<8x1xf32>
    %77 = vector.broadcast %74 : vector<8x1xf32> to vector<8x8xf32>
    %78 = arith.subf %71, %77 : vector<8x8xf32>
    %79 = math.exp %78 : vector<8x8xf32>
    %80 = arith.mulf %76, %65 : vector<8x1xf32>
    %cst_45 = arith.constant dense<0.000000e+00> : vector<8xf32>
    %81 = vector.multi_reduction <add>, %79, %cst_45 [1] : vector<8x8xf32> to vector<8xf32>
    %82 = vector.shape_cast %81 : vector<8xf32> to vector<8x1xf32>
    %83 = arith.addf %80, %82 : vector<8x1xf32>
    %84 = vector.broadcast %76 : vector<8x1xf32> to vector<8x8xf32>
    %85 = arith.mulf %84, %66 : vector<8x8xf32>
    %cst_46 = arith.constant dense<0.000000e+00> : vector<8x8xf32>
    %86 = tpu.matmul %79, %63, %cst_46 {dimension_numbers = #tpu.dot_dimension_numbers<[1], [0], [0], [1], [0, 0, 1, 1], [], []>} : vector<8x8xf32>, vector<8x8xf32>, vector<8x8xf32> -> vector<8x8xf32>
    %87 = arith.addf %85, %86 : vector<8x8xf32>
    %88 = tpu.reciprocal %83 {approx = true} : vector<8x1xf32> -> vector<8x1xf32>
    %89 = vector.broadcast %88 : vector<8x1xf32> to vector<8x8xf32>
    %90 = arith.mulf %87, %89 : vector<8x8xf32>
    %91 = vector.extract_strided_slice %51 {offsets = [0, 8], sizes = [8, 8], strides = [1, 1]} : vector<8x32xf32> to vector<8x8xf32>
    %92 = vector.extract_strided_slice %52 {offsets = [0, 8], sizes = [8, 8], strides = [1, 1]} : vector<8x32xf32> to vector<8x8xf32>
    %93 = vector.extract_strided_slice %53 {offsets = [0, 8], sizes = [8, 8], strides = [1, 1]} : vector<8x32xf32> to vector<8x8xf32>
    %cst_47 = arith.constant 0xFF800000 : f32
    %94 = vector.broadcast %cst_47 : f32 to vector<8x1xf32>
    %cst_48 = arith.constant 0.000000e+00 : f32
    %95 = vector.broadcast %cst_48 : f32 to vector<8x1xf32>
    %cst_49 = arith.constant 0.000000e+00 : f32
    %96 = vector.broadcast %cst_49 : f32 to vector<8x8xf32>
    %cst_50 = arith.constant dense<0.000000e+00> : vector<8x8xf32>
    %97 = tpu.matmul %91, %92, %cst_50 {dimension_numbers = #tpu.dot_dimension_numbers<[1], [1], [0], [0], [0, 0, 1, 0], [], []>} : vector<8x8xf32>, vector<8x8xf32>, vector<8x8xf32> -> vector<8x8xf32>
    %cst_51 = arith.constant 0.353553385 : f32
    %98 = vector.broadcast %cst_51 : f32 to vector<8x8xf32>
    %99 = arith.mulf %97, %98 : vector<8x8xf32>
    %100 = vector.broadcast %60 : vector<1x8xf32> to vector<8x8xf32>
    %101 = arith.addf %99, %100 : vector<8x8xf32>
    %cst_52 = arith.constant dense<0xFF800000> : vector<8xf32>
    %102 = vector.multi_reduction <maximumf>, %101, %cst_52 [1] : vector<8x8xf32> to vector<8xf32>
    %103 = vector.shape_cast %102 : vector<8xf32> to vector<8x1xf32>
    %104 = arith.maximumf %94, %103 : vector<8x1xf32>
    %105 = arith.subf %94, %104 : vector<8x1xf32>
    %106 = math.exp %105 : vector<8x1xf32>
    %107 = vector.broadcast %104 : vector<8x1xf32> to vector<8x8xf32>
    %108 = arith.subf %101, %107 : vector<8x8xf32>
    %109 = math.exp %108 : vector<8x8xf32>
    %110 = arith.mulf %106, %95 : vector<8x1xf32>
    %cst_53 = arith.constant dense<0.000000e+00> : vector<8xf32>
    %111 = vector.multi_reduction <add>, %109, %cst_53 [1] : vector<8x8xf32> to vector<8xf32>
    %112 = vector.shape_cast %111 : vector<8xf32> to vector<8x1xf32>
    %113 = arith.addf %110, %112 : vector<8x1xf32>
    %114 = vector.broadcast %106 : vector<8x1xf32> to vector<8x8xf32>
    %115 = arith.mulf %114, %96 : vector<8x8xf32>
    %cst_54 = arith.constant dense<0.000000e+00> : vector<8x8xf32>
    %116 = tpu.matmul %109, %93, %cst_54 {dimension_numbers = #tpu.dot_dimension_numbers<[1], [0], [0], [1], [0, 0, 1, 1], [], []>} : vector<8x8xf32>, vector<8x8xf32>, vector<8x8xf32> -> vector<8x8xf32>
    %117 = arith.addf %115, %116 : vector<8x8xf32>
    %118 = tpu.reciprocal %113 {approx = true} : vector<8x1xf32> -> vector<8x1xf32>
    %119 = vector.broadcast %118 : vector<8x1xf32> to vector<8x8xf32>
    %120 = arith.mulf %117, %119 : vector<8x8xf32>
    %121 = vector.extract_strided_slice %51 {offsets = [0, 16], sizes = [8, 8], strides = [1, 1]} : vector<8x32xf32> to vector<8x8xf32>
    %122 = vector.extract_strided_slice %52 {offsets = [0, 16], sizes = [8, 8], strides = [1, 1]} : vector<8x32xf32> to vector<8x8xf32>
    %123 = vector.extract_strided_slice %53 {offsets = [0, 16], sizes = [8, 8], strides = [1, 1]} : vector<8x32xf32> to vector<8x8xf32>
    %cst_55 = arith.constant 0xFF800000 : f32
    %124 = vector.broadcast %cst_55 : f32 to vector<8x1xf32>
    %cst_56 = arith.constant 0.000000e+00 : f32
    %125 = vector.broadcast %cst_56 : f32 to vector<8x1xf32>
    %cst_57 = arith.constant 0.000000e+00 : f32
    %126 = vector.broadcast %cst_57 : f32 to vector<8x8xf32>
    %cst_58 = arith.constant dense<0.000000e+00> : vector<8x8xf32>
    %127 = tpu.matmul %121, %122, %cst_58 {dimension_numbers = #tpu.dot_dimension_numbers<[1], [1], [0], [0], [0, 0, 1, 0], [], []>} : vector<8x8xf32>, vector<8x8xf32>, vector<8x8xf32> -> vector<8x8xf32>
    %cst_59 = arith.constant 0.353553385 : f32
    %128 = vector.broadcast %cst_59 : f32 to vector<8x8xf32>
    %129 = arith.mulf %127, %128 : vector<8x8xf32>
    %130 = vector.broadcast %60 : vector<1x8xf32> to vector<8x8xf32>
    %131 = arith.addf %129, %130 : vector<8x8xf32>
    %cst_60 = arith.constant dense<0xFF800000> : vector<8xf32>
    %132 = vector.multi_reduction <maximumf>, %131, %cst_60 [1] : vector<8x8xf32> to vector<8xf32>
    %133 = vector.shape_cast %132 : vector<8xf32> to vector<8x1xf32>
    %134 = arith.maximumf %124, %133 : vector<8x1xf32>
    %135 = arith.subf %124, %134 : vector<8x1xf32>
    %136 = math.exp %135 : vector<8x1xf32>
    %137 = vector.broadcast %134 : vector<8x1xf32> to vector<8x8xf32>
    %138 = arith.subf %131, %137 : vector<8x8xf32>
    %139 = math.exp %138 : vector<8x8xf32>
    %140 = arith.mulf %136, %125 : vector<8x1xf32>
    %cst_61 = arith.constant dense<0.000000e+00> : vector<8xf32>
    %141 = vector.multi_reduction <add>, %139, %cst_61 [1] : vector<8x8xf32> to vector<8xf32>
    %142 = vector.shape_cast %141 : vector<8xf32> to vector<8x1xf32>
    %143 = arith.addf %140, %142 : vector<8x1xf32>
    %144 = vector.broadcast %136 : vector<8x1xf32> to vector<8x8xf32>
    %145 = arith.mulf %144, %126 : vector<8x8xf32>
    %cst_62 = arith.constant dense<0.000000e+00> : vector<8x8xf32>
    %146 = tpu.matmul %139, %123, %cst_62 {dimension_numbers = #tpu.dot_dimension_numbers<[1], [0], [0], [1], [0, 0, 1, 1], [], []>} : vector<8x8xf32>, vector<8x8xf32>, vector<8x8xf32> -> vector<8x8xf32>
    %147 = arith.addf %145, %146 : vector<8x8xf32>
    %148 = tpu.reciprocal %143 {approx = true} : vector<8x1xf32> -> vector<8x1xf32>
    %149 = vector.broadcast %148 : vector<8x1xf32> to vector<8x8xf32>
    %150 = arith.mulf %147, %149 : vector<8x8xf32>
    %151 = vector.extract_strided_slice %51 {offsets = [0, 24], sizes = [8, 8], strides = [1, 1]} : vector<8x32xf32> to vector<8x8xf32>
    %152 = vector.extract_strided_slice %52 {offsets = [0, 24], sizes = [8, 8], strides = [1, 1]} : vector<8x32xf32> to vector<8x8xf32>
    %153 = vector.extract_strided_slice %53 {offsets = [0, 24], sizes = [8, 8], strides = [1, 1]} : vector<8x32xf32> to vector<8x8xf32>
    %cst_63 = arith.constant 0xFF800000 : f32
    %154 = vector.broadcast %cst_63 : f32 to vector<8x1xf32>
    %cst_64 = arith.constant 0.000000e+00 : f32
    %155 = vector.broadcast %cst_64 : f32 to vector<8x1xf32>
    %cst_65 = arith.constant 0.000000e+00 : f32
    %156 = vector.broadcast %cst_65 : f32 to vector<8x8xf32>
    %cst_66 = arith.constant dense<0.000000e+00> : vector<8x8xf32>
    %157 = tpu.matmul %151, %152, %cst_66 {dimension_numbers = #tpu.dot_dimension_numbers<[1], [1], [0], [0], [0, 0, 1, 0], [], []>} : vector<8x8xf32>, vector<8x8xf32>, vector<8x8xf32> -> vector<8x8xf32>
    %cst_67 = arith.constant 0.353553385 : f32
    %158 = vector.broadcast %cst_67 : f32 to vector<8x8xf32>
    %159 = arith.mulf %157, %158 : vector<8x8xf32>
    %160 = vector.broadcast %60 : vector<1x8xf32> to vector<8x8xf32>
    %161 = arith.addf %159, %160 : vector<8x8xf32>
    %cst_68 = arith.constant dense<0xFF800000> : vector<8xf32>
    %162 = vector.multi_reduction <maximumf>, %161, %cst_68 [1] : vector<8x8xf32> to vector<8xf32>
    %163 = vector.shape_cast %162 : vector<8xf32> to vector<8x1xf32>
    %164 = arith.maximumf %154, %163 : vector<8x1xf32>
    %165 = arith.subf %154, %164 : vector<8x1xf32>
    %166 = math.exp %165 : vector<8x1xf32>
    %167 = vector.broadcast %164 : vector<8x1xf32> to vector<8x8xf32>
    %168 = arith.subf %161, %167 : vector<8x8xf32>
    %169 = math.exp %168 : vector<8x8xf32>
    %170 = arith.mulf %166, %155 : vector<8x1xf32>
    %cst_69 = arith.constant dense<0.000000e+00> : vector<8xf32>
    %171 = vector.multi_reduction <add>, %169, %cst_69 [1] : vector<8x8xf32> to vector<8xf32>
    %172 = vector.shape_cast %171 : vector<8xf32> to vector<8x1xf32>
    %173 = arith.addf %170, %172 : vector<8x1xf32>
    %174 = vector.broadcast %166 : vector<8x1xf32> to vector<8x8xf32>
    %175 = arith.mulf %174, %156 : vector<8x8xf32>
    %cst_70 = arith.constant dense<0.000000e+00> : vector<8x8xf32>
    %176 = tpu.matmul %169, %153, %cst_70 {dimension_numbers = #tpu.dot_dimension_numbers<[1], [0], [0], [1], [0, 0, 1, 1], [], []>} : vector<8x8xf32>, vector<8x8xf32>, vector<8x8xf32> -> vector<8x8xf32>
    %177 = arith.addf %175, %176 : vector<8x8xf32>
    %178 = tpu.reciprocal %173 {approx = true} : vector<8x1xf32> -> vector<8x1xf32>
    %179 = vector.broadcast %178 : vector<8x1xf32> to vector<8x8xf32>
    %180 = arith.mulf %177, %179 : vector<8x8xf32>
    %181 = tpu.concatenate %90, %120, %150, %180 in 1 : vector<8x8xf32>, vector<8x8xf32>, vector<8x8xf32>, vector<8x8xf32> -> vector<8x32xf32>
    %182 = vector.extract_strided_slice %36 {offsets = [8, 0], sizes = [8, 32], strides = [1, 1]} : vector<16x32xf32> to vector<8x32xf32>
    %183 = vector.extract_strided_slice %43 {offsets = [8, 0], sizes = [8, 32], strides = [1, 1]} : vector<16x32xf32> to vector<8x32xf32>
    %184 = vector.extract_strided_slice %50 {offsets = [8, 0], sizes = [8, 32], strides = [1, 1]} : vector<16x32xf32> to vector<8x32xf32>
    %c1 = arith.constant 1 : index
    %c0_71 = arith.constant 0 : index
    %c0_72 = arith.constant 0 : index
    %185 = vector.load %arg3[%c1, %c0_71, %c0_72] : memref<2x1x8xf32, #tpu.memory_space<vmem>>, vector<1x1x8xf32>
    %186 = vector.shape_cast %185 : vector<1x1x8xf32> to vector<1x8xf32>
    %cst_73 = arith.constant 0.000000e+00 : f32
    %187 = vector.broadcast %cst_73 : f32 to vector<1x8xf32>
    %188 = arith.cmpf ogt, %186, %187 : vector<1x8xf32>
    %cst_74 = arith.constant 0.000000e+00 : f32
    %cst_75 = arith.constant -1.000000e+09 : f32
    %189 = vector.broadcast %cst_74 : f32 to vector<1x8xf32>
    %190 = vector.broadcast %cst_75 : f32 to vector<1x8xf32>
    %191 = arith.select %188, %189, %190 : vector<1x8xi1>, vector<1x8xf32>
    %192 = vector.extract_strided_slice %182 {offsets = [0, 0], sizes = [8, 8], strides = [1, 1]} : vector<8x32xf32> to vector<8x8xf32>
    %193 = vector.extract_strided_slice %183 {offsets = [0, 0], sizes = [8, 8], strides = [1, 1]} : vector<8x32xf32> to vector<8x8xf32>
    %194 = vector.extract_strided_slice %184 {offsets = [0, 0], sizes = [8, 8], strides = [1, 1]} : vector<8x32xf32> to vector<8x8xf32>
    %cst_76 = arith.constant 0xFF800000 : f32
    %195 = vector.broadcast %cst_76 : f32 to vector<8x1xf32>
    %cst_77 = arith.constant 0.000000e+00 : f32
    %196 = vector.broadcast %cst_77 : f32 to vector<8x1xf32>
    %cst_78 = arith.constant 0.000000e+00 : f32
    %197 = vector.broadcast %cst_78 : f32 to vector<8x8xf32>
    %cst_79 = arith.constant dense<0.000000e+00> : vector<8x8xf32>
    %198 = tpu.matmul %192, %193, %cst_79 {dimension_numbers = #tpu.dot_dimension_numbers<[1], [1], [0], [0], [0, 0, 1, 0], [], []>} : vector<8x8xf32>, vector<8x8xf32>, vector<8x8xf32> -> vector<8x8xf32>
    %cst_80 = arith.constant 0.353553385 : f32
    %199 = vector.broadcast %cst_80 : f32 to vector<8x8xf32>
    %200 = arith.mulf %198, %199 : vector<8x8xf32>
    %201 = vector.broadcast %191 : vector<1x8xf32> to vector<8x8xf32>
    %202 = arith.addf %200, %201 : vector<8x8xf32>
    %cst_81 = arith.constant dense<0xFF800000> : vector<8xf32>
    %203 = vector.multi_reduction <maximumf>, %202, %cst_81 [1] : vector<8x8xf32> to vector<8xf32>
    %204 = vector.shape_cast %203 : vector<8xf32> to vector<8x1xf32>
    %205 = arith.maximumf %195, %204 : vector<8x1xf32>
    %206 = arith.subf %195, %205 : vector<8x1xf32>
    %207 = math.exp %206 : vector<8x1xf32>
    %208 = vector.broadcast %205 : vector<8x1xf32> to vector<8x8xf32>
    %209 = arith.subf %202, %208 : vector<8x8xf32>
    %210 = math.exp %209 : vector<8x8xf32>
    %211 = arith.mulf %207, %196 : vector<8x1xf32>
    %cst_82 = arith.constant dense<0.000000e+00> : vector<8xf32>
    %212 = vector.multi_reduction <add>, %210, %cst_82 [1] : vector<8x8xf32> to vector<8xf32>
    %213 = vector.shape_cast %212 : vector<8xf32> to vector<8x1xf32>
    %214 = arith.addf %211, %213 : vector<8x1xf32>
    %215 = vector.broadcast %207 : vector<8x1xf32> to vector<8x8xf32>
    %216 = arith.mulf %215, %197 : vector<8x8xf32>
    %cst_83 = arith.constant dense<0.000000e+00> : vector<8x8xf32>
    %217 = tpu.matmul %210, %194, %cst_83 {dimension_numbers = #tpu.dot_dimension_numbers<[1], [0], [0], [1], [0, 0, 1, 1], [], []>} : vector<8x8xf32>, vector<8x8xf32>, vector<8x8xf32> -> vector<8x8xf32>
    %218 = arith.addf %216, %217 : vector<8x8xf32>
    %219 = tpu.reciprocal %214 {approx = true} : vector<8x1xf32> -> vector<8x1xf32>
    %220 = vector.broadcast %219 : vector<8x1xf32> to vector<8x8xf32>
    %221 = arith.mulf %218, %220 : vector<8x8xf32>
    %222 = vector.extract_strided_slice %182 {offsets = [0, 8], sizes = [8, 8], strides = [1, 1]} : vector<8x32xf32> to vector<8x8xf32>
    %223 = vector.extract_strided_slice %183 {offsets = [0, 8], sizes = [8, 8], strides = [1, 1]} : vector<8x32xf32> to vector<8x8xf32>
    %224 = vector.extract_strided_slice %184 {offsets = [0, 8], sizes = [8, 8], strides = [1, 1]} : vector<8x32xf32> to vector<8x8xf32>
    %cst_84 = arith.constant 0xFF800000 : f32
    %225 = vector.broadcast %cst_84 : f32 to vector<8x1xf32>
    %cst_85 = arith.constant 0.000000e+00 : f32
    %226 = vector.broadcast %cst_85 : f32 to vector<8x1xf32>
    %cst_86 = arith.constant 0.000000e+00 : f32
    %227 = vector.broadcast %cst_86 : f32 to vector<8x8xf32>
    %cst_87 = arith.constant dense<0.000000e+00> : vector<8x8xf32>
    %228 = tpu.matmul %222, %223, %cst_87 {dimension_numbers = #tpu.dot_dimension_numbers<[1], [1], [0], [0], [0, 0, 1, 0], [], []>} : vector<8x8xf32>, vector<8x8xf32>, vector<8x8xf32> -> vector<8x8xf32>
    %cst_88 = arith.constant 0.353553385 : f32
    %229 = vector.broadcast %cst_88 : f32 to vector<8x8xf32>
    %230 = arith.mulf %228, %229 : vector<8x8xf32>
    %231 = vector.broadcast %191 : vector<1x8xf32> to vector<8x8xf32>
    %232 = arith.addf %230, %231 : vector<8x8xf32>
    %cst_89 = arith.constant dense<0xFF800000> : vector<8xf32>
    %233 = vector.multi_reduction <maximumf>, %232, %cst_89 [1] : vector<8x8xf32> to vector<8xf32>
    %234 = vector.shape_cast %233 : vector<8xf32> to vector<8x1xf32>
    %235 = arith.maximumf %225, %234 : vector<8x1xf32>
    %236 = arith.subf %225, %235 : vector<8x1xf32>
    %237 = math.exp %236 : vector<8x1xf32>
    %238 = vector.broadcast %235 : vector<8x1xf32> to vector<8x8xf32>
    %239 = arith.subf %232, %238 : vector<8x8xf32>
    %240 = math.exp %239 : vector<8x8xf32>
    %241 = arith.mulf %237, %226 : vector<8x1xf32>
    %cst_90 = arith.constant dense<0.000000e+00> : vector<8xf32>
    %242 = vector.multi_reduction <add>, %240, %cst_90 [1] : vector<8x8xf32> to vector<8xf32>
    %243 = vector.shape_cast %242 : vector<8xf32> to vector<8x1xf32>
    %244 = arith.addf %241, %243 : vector<8x1xf32>
    %245 = vector.broadcast %237 : vector<8x1xf32> to vector<8x8xf32>
    %246 = arith.mulf %245, %227 : vector<8x8xf32>
    %cst_91 = arith.constant dense<0.000000e+00> : vector<8x8xf32>
    %247 = tpu.matmul %240, %224, %cst_91 {dimension_numbers = #tpu.dot_dimension_numbers<[1], [0], [0], [1], [0, 0, 1, 1], [], []>} : vector<8x8xf32>, vector<8x8xf32>, vector<8x8xf32> -> vector<8x8xf32>
    %248 = arith.addf %246, %247 : vector<8x8xf32>
    %249 = tpu.reciprocal %244 {approx = true} : vector<8x1xf32> -> vector<8x1xf32>
    %250 = vector.broadcast %249 : vector<8x1xf32> to vector<8x8xf32>
    %251 = arith.mulf %248, %250 : vector<8x8xf32>
    %252 = vector.extract_strided_slice %182 {offsets = [0, 16], sizes = [8, 8], strides = [1, 1]} : vector<8x32xf32> to vector<8x8xf32>
    %253 = vector.extract_strided_slice %183 {offsets = [0, 16], sizes = [8, 8], strides = [1, 1]} : vector<8x32xf32> to vector<8x8xf32>
    %254 = vector.extract_strided_slice %184 {offsets = [0, 16], sizes = [8, 8], strides = [1, 1]} : vector<8x32xf32> to vector<8x8xf32>
    %cst_92 = arith.constant 0xFF800000 : f32
    %255 = vector.broadcast %cst_92 : f32 to vector<8x1xf32>
    %cst_93 = arith.constant 0.000000e+00 : f32
    %256 = vector.broadcast %cst_93 : f32 to vector<8x1xf32>
    %cst_94 = arith.constant 0.000000e+00 : f32
    %257 = vector.broadcast %cst_94 : f32 to vector<8x8xf32>
    %cst_95 = arith.constant dense<0.000000e+00> : vector<8x8xf32>
    %258 = tpu.matmul %252, %253, %cst_95 {dimension_numbers = #tpu.dot_dimension_numbers<[1], [1], [0], [0], [0, 0, 1, 0], [], []>} : vector<8x8xf32>, vector<8x8xf32>, vector<8x8xf32> -> vector<8x8xf32>
    %cst_96 = arith.constant 0.353553385 : f32
    %259 = vector.broadcast %cst_96 : f32 to vector<8x8xf32>
    %260 = arith.mulf %258, %259 : vector<8x8xf32>
    %261 = vector.broadcast %191 : vector<1x8xf32> to vector<8x8xf32>
    %262 = arith.addf %260, %261 : vector<8x8xf32>
    %cst_97 = arith.constant dense<0xFF800000> : vector<8xf32>
    %263 = vector.multi_reduction <maximumf>, %262, %cst_97 [1] : vector<8x8xf32> to vector<8xf32>
    %264 = vector.shape_cast %263 : vector<8xf32> to vector<8x1xf32>
    %265 = arith.maximumf %255, %264 : vector<8x1xf32>
    %266 = arith.subf %255, %265 : vector<8x1xf32>
    %267 = math.exp %266 : vector<8x1xf32>
    %268 = vector.broadcast %265 : vector<8x1xf32> to vector<8x8xf32>
    %269 = arith.subf %262, %268 : vector<8x8xf32>
    %270 = math.exp %269 : vector<8x8xf32>
    %271 = arith.mulf %267, %256 : vector<8x1xf32>
    %cst_98 = arith.constant dense<0.000000e+00> : vector<8xf32>
    %272 = vector.multi_reduction <add>, %270, %cst_98 [1] : vector<8x8xf32> to vector<8xf32>
    %273 = vector.shape_cast %272 : vector<8xf32> to vector<8x1xf32>
    %274 = arith.addf %271, %273 : vector<8x1xf32>
    %275 = vector.broadcast %267 : vector<8x1xf32> to vector<8x8xf32>
    %276 = arith.mulf %275, %257 : vector<8x8xf32>
    %cst_99 = arith.constant dense<0.000000e+00> : vector<8x8xf32>
    %277 = tpu.matmul %270, %254, %cst_99 {dimension_numbers = #tpu.dot_dimension_numbers<[1], [0], [0], [1], [0, 0, 1, 1], [], []>} : vector<8x8xf32>, vector<8x8xf32>, vector<8x8xf32> -> vector<8x8xf32>
    %278 = arith.addf %276, %277 : vector<8x8xf32>
    %279 = tpu.reciprocal %274 {approx = true} : vector<8x1xf32> -> vector<8x1xf32>
    %280 = vector.broadcast %279 : vector<8x1xf32> to vector<8x8xf32>
    %281 = arith.mulf %278, %280 : vector<8x8xf32>
    %282 = vector.extract_strided_slice %182 {offsets = [0, 24], sizes = [8, 8], strides = [1, 1]} : vector<8x32xf32> to vector<8x8xf32>
    %283 = vector.extract_strided_slice %183 {offsets = [0, 24], sizes = [8, 8], strides = [1, 1]} : vector<8x32xf32> to vector<8x8xf32>
    %284 = vector.extract_strided_slice %184 {offsets = [0, 24], sizes = [8, 8], strides = [1, 1]} : vector<8x32xf32> to vector<8x8xf32>
    %cst_100 = arith.constant 0xFF800000 : f32
    %285 = vector.broadcast %cst_100 : f32 to vector<8x1xf32>
    %cst_101 = arith.constant 0.000000e+00 : f32
    %286 = vector.broadcast %cst_101 : f32 to vector<8x1xf32>
    %cst_102 = arith.constant 0.000000e+00 : f32
    %287 = vector.broadcast %cst_102 : f32 to vector<8x8xf32>
    %cst_103 = arith.constant dense<0.000000e+00> : vector<8x8xf32>
    %288 = tpu.matmul %282, %283, %cst_103 {dimension_numbers = #tpu.dot_dimension_numbers<[1], [1], [0], [0], [0, 0, 1, 0], [], []>} : vector<8x8xf32>, vector<8x8xf32>, vector<8x8xf32> -> vector<8x8xf32>
    %cst_104 = arith.constant 0.353553385 : f32
    %289 = vector.broadcast %cst_104 : f32 to vector<8x8xf32>
    %290 = arith.mulf %288, %289 : vector<8x8xf32>
    %291 = vector.broadcast %191 : vector<1x8xf32> to vector<8x8xf32>
    %292 = arith.addf %290, %291 : vector<8x8xf32>
    %cst_105 = arith.constant dense<0xFF800000> : vector<8xf32>
    %293 = vector.multi_reduction <maximumf>, %292, %cst_105 [1] : vector<8x8xf32> to vector<8xf32>
    %294 = vector.shape_cast %293 : vector<8xf32> to vector<8x1xf32>
    %295 = arith.maximumf %285, %294 : vector<8x1xf32>
    %296 = arith.subf %285, %295 : vector<8x1xf32>
    %297 = math.exp %296 : vector<8x1xf32>
    %298 = vector.broadcast %295 : vector<8x1xf32> to vector<8x8xf32>
    %299 = arith.subf %292, %298 : vector<8x8xf32>
    %300 = math.exp %299 : vector<8x8xf32>
    %301 = arith.mulf %297, %286 : vector<8x1xf32>
    %cst_106 = arith.constant dense<0.000000e+00> : vector<8xf32>
    %302 = vector.multi_reduction <add>, %300, %cst_106 [1] : vector<8x8xf32> to vector<8xf32>
    %303 = vector.shape_cast %302 : vector<8xf32> to vector<8x1xf32>
    %304 = arith.addf %301, %303 : vector<8x1xf32>
    %305 = vector.broadcast %297 : vector<8x1xf32> to vector<8x8xf32>
    %306 = arith.mulf %305, %287 : vector<8x8xf32>
    %cst_107 = arith.constant dense<0.000000e+00> : vector<8x8xf32>
    %307 = tpu.matmul %300, %284, %cst_107 {dimension_numbers = #tpu.dot_dimension_numbers<[1], [0], [0], [1], [0, 0, 1, 1], [], []>} : vector<8x8xf32>, vector<8x8xf32>, vector<8x8xf32> -> vector<8x8xf32>
    %308 = arith.addf %306, %307 : vector<8x8xf32>
    %309 = tpu.reciprocal %304 {approx = true} : vector<8x1xf32> -> vector<8x1xf32>
    %310 = vector.broadcast %309 : vector<8x1xf32> to vector<8x8xf32>
    %311 = arith.mulf %308, %310 : vector<8x8xf32>
    %312 = tpu.concatenate %221, %251, %281, %311 in 1 : vector<8x8xf32>, vector<8x8xf32>, vector<8x8xf32>, vector<8x8xf32> -> vector<8x32xf32>
    %313 = tpu.concatenate %181, %312 in 0 : vector<8x32xf32>, vector<8x32xf32> -> vector<16x32xf32>
    %c0_108 = arith.constant 0 : index
    %c0_109 = arith.constant 0 : index
    %c0_110 = arith.constant 0 : index
    %314 = vector.load %arg12[%c0_108, %c0_109, %c0_110] : memref<1x32x32xf32, #tpu.memory_space<vmem>>, vector<1x32x32xf32>
    %315 = vector.shape_cast %314 : vector<1x32x32xf32> to vector<32x32xf32>
    %cst_111 = arith.constant dense<0.000000e+00> : vector<16x32xf32>
    %316 = tpu.matmul %313, %315, %cst_111 {dimension_numbers = #tpu.dot_dimension_numbers<[1], [0], [0], [1], [0, 0, 1, 1], [], []>} : vector<16x32xf32>, vector<32x32xf32>, vector<16x32xf32> -> vector<16x32xf32>
    %c0_112 = arith.constant 0 : index
    %c0_113 = arith.constant 0 : index
    %c0_114 = arith.constant 0 : index
    %317 = vector.load %arg13[%c0_112, %c0_113, %c0_114] : memref<1x1x32xf32, #tpu.memory_space<vmem>>, vector<1x1x32xf32>
    %318 = vector.shape_cast %317 : vector<1x1x32xf32> to vector<1x32xf32>
    %319 = vector.broadcast %318 : vector<1x32xf32> to vector<16x32xf32>
    %320 = arith.addf %316, %319 : vector<16x32xf32>
    %321 = arith.addf %3, %320 : vector<16x32xf32>
    %c0_115 = arith.constant 0 : index
    %c0_116 = arith.constant 0 : index
    %c0_117 = arith.constant 0 : index
    %322 = vector.load %arg14[%c0_115, %c0_116, %c0_117] : memref<1x1x32xf32, #tpu.memory_space<vmem>>, vector<1x1x32xf32>
    %323 = vector.shape_cast %322 : vector<1x1x32xf32> to vector<1x32xf32>
    %c0_118 = arith.constant 0 : index
    %c0_119 = arith.constant 0 : index
    %c0_120 = arith.constant 0 : index
    %324 = vector.load %arg15[%c0_118, %c0_119, %c0_120] : memref<1x1x32xf32, #tpu.memory_space<vmem>>, vector<1x1x32xf32>
    %325 = vector.shape_cast %324 : vector<1x1x32xf32> to vector<1x32xf32>
    %cst_121 = arith.constant dense<0.000000e+00> : vector<16xf32>
    %326 = vector.multi_reduction <add>, %321, %cst_121 [1] : vector<16x32xf32> to vector<16xf32>
    %327 = vector.shape_cast %326 : vector<16xf32> to vector<16x1xf32>
    %cst_122 = arith.constant 3.200000e+01 : f32
    %328 = vector.broadcast %cst_122 : f32 to vector<16x1xf32>
    %329 = arith.divf %327, %328 : vector<16x1xf32>
    %330 = vector.broadcast %329 : vector<16x1xf32> to vector<16x32xf32>
    %331 = arith.subf %321, %330 : vector<16x32xf32>
    %332 = arith.mulf %331, %331 : vector<16x32xf32>
    %cst_123 = arith.constant dense<0.000000e+00> : vector<16xf32>
    %333 = vector.multi_reduction <add>, %332, %cst_123 [1] : vector<16x32xf32> to vector<16xf32>
    %334 = vector.shape_cast %333 : vector<16xf32> to vector<16x1xf32>
    %cst_124 = arith.constant 0.0322580636 : f32
    %335 = vector.broadcast %cst_124 : f32 to vector<16x1xf32>
    %336 = arith.mulf %334, %335 : vector<16x1xf32>
    %337 = vector.broadcast %329 : vector<16x1xf32> to vector<16x32xf32>
    %338 = arith.subf %321, %337 : vector<16x32xf32>
    %339 = vector.broadcast %323 : vector<1x32xf32> to vector<16x32xf32>
    %340 = arith.mulf %339, %338 : vector<16x32xf32>
    %341 = math.sqrt %336 : vector<16x1xf32>
    %cst_125 = arith.constant 9.99999997E-7 : f32
    %342 = vector.broadcast %cst_125 : f32 to vector<16x1xf32>
    %343 = arith.addf %341, %342 : vector<16x1xf32>
    %344 = vector.broadcast %343 : vector<16x1xf32> to vector<16x32xf32>
    %345 = arith.divf %340, %344 : vector<16x32xf32>
    %346 = vector.broadcast %325 : vector<1x32xf32> to vector<16x32xf32>
    %347 = arith.addf %345, %346 : vector<16x32xf32>
    %c0_126 = arith.constant 0 : index
    %c0_127 = arith.constant 0 : index
    %c0_128 = arith.constant 0 : index
    %348 = vector.load %arg16[%c0_126, %c0_127, %c0_128] : memref<1x32x64xf32, #tpu.memory_space<vmem>>, vector<1x32x64xf32>
    %349 = vector.shape_cast %348 : vector<1x32x64xf32> to vector<32x64xf32>
    %cst_129 = arith.constant dense<0.000000e+00> : vector<16x64xf32>
    %350 = tpu.matmul %347, %349, %cst_129 {dimension_numbers = #tpu.dot_dimension_numbers<[1], [0], [0], [1], [0, 0, 1, 1], [], []>} : vector<16x32xf32>, vector<32x64xf32>, vector<16x64xf32> -> vector<16x64xf32>
    %c0_130 = arith.constant 0 : index
    %c0_131 = arith.constant 0 : index
    %c0_132 = arith.constant 0 : index
    %351 = vector.load %arg17[%c0_130, %c0_131, %c0_132] : memref<1x1x64xf32, #tpu.memory_space<vmem>>, vector<1x1x64xf32>
    %352 = vector.shape_cast %351 : vector<1x1x64xf32> to vector<1x64xf32>
    %353 = vector.broadcast %352 : vector<1x64xf32> to vector<16x64xf32>
    %354 = arith.addf %350, %353 : vector<16x64xf32>
    %cst_133 = arith.constant 0.000000e+00 : f32
    %355 = vector.broadcast %cst_133 : f32 to vector<16x64xf32>
    %356 = arith.maximumf %354, %355 : vector<16x64xf32>
    %c0_134 = arith.constant 0 : index
    %c0_135 = arith.constant 0 : index
    %c0_136 = arith.constant 0 : index
    %357 = vector.load %arg18[%c0_134, %c0_135, %c0_136] : memref<1x64x32xf32, #tpu.memory_space<vmem>>, vector<1x64x32xf32>
    %358 = vector.shape_cast %357 : vector<1x64x32xf32> to vector<64x32xf32>
    %cst_137 = arith.constant dense<0.000000e+00> : vector<16x32xf32>
    %359 = tpu.matmul %356, %358, %cst_137 {dimension_numbers = #tpu.dot_dimension_numbers<[1], [0], [0], [1], [0, 0, 1, 1], [], []>} : vector<16x64xf32>, vector<64x32xf32>, vector<16x32xf32> -> vector<16x32xf32>
    %360 = arith.addf %321, %359 : vector<16x32xf32>
    %c0_138 = arith.constant 0 : index
    %c0_139 = arith.constant 0 : index
    %c0_140 = arith.constant 0 : index
    %361 = vector.load %arg19[%c0_138, %c0_139, %c0_140] : memref<1x1x32xf32, #tpu.memory_space<vmem>>, vector<1x1x32xf32>
    %362 = vector.shape_cast %361 : vector<1x1x32xf32> to vector<1x32xf32>
    %363 = vector.broadcast %362 : vector<1x32xf32> to vector<16x32xf32>
    %364 = arith.addf %360, %363 : vector<16x32xf32>
    %c0_141 = arith.constant 0 : index
    %c0_142 = arith.constant 0 : index
    %365 = vector.load %arg22[%c0_141, %c0_142] : memref<16x32xf32, #tpu.memory_space<vmem>>, vector<16x32xf32>
    tpu.vector_store %arg22[%c0_141, %c0_142], %364 {strides = array<i32>} : memref<16x32xf32, #tpu.memory_space<vmem>>, vector<16x32xf32>,
    %c1_i32 = arith.constant 1 : i32
    %366 = arith.cmpi eq, %arg1, %c1_i32 : i32
    %367 = arith.extui %366 : i1 to i32
    %c0_i32_143 = arith.constant 0 : i32
    %368 = arith.cmpi ne, %367, %c0_i32_143 : i32
    scf.if %368 {
      %c0_144 = arith.constant 0 : index
      %c0_145 = arith.constant 0 : index
      %369 = vector.load %arg20[%c0_144, %c0_145] : memref<1x32xf32, #tpu.memory_space<vmem>>, vector<1x32xf32>
      %c0_146 = arith.constant 0 : index
      %c0_147 = arith.constant 0 : index
      %370 = vector.load %arg21[%c0_146, %c0_147] : memref<1x32xf32, #tpu.memory_space<vmem>>, vector<1x32xf32>
      %cst_148 = arith.constant dense<0.000000e+00> : vector<16xf32>
      %371 = vector.multi_reduction <add>, %364, %cst_148 [1] : vector<16x32xf32> to vector<16xf32>
      %372 = vector.shape_cast %371 : vector<16xf32> to vector<16x1xf32>
      %cst_149 = arith.constant 3.200000e+01 : f32
      %373 = vector.broadcast %cst_149 : f32 to vector<16x1xf32>
      %374 = arith.divf %372, %373 : vector<16x1xf32>
      %375 = vector.broadcast %374 : vector<16x1xf32> to vector<16x32xf32>
      %376 = arith.subf %364, %375 : vector<16x32xf32>
      %377 = arith.mulf %376, %376 : vector<16x32xf32>
      %cst_150 = arith.constant dense<0.000000e+00> : vector<16xf32>
      %378 = vector.multi_reduction <add>, %377, %cst_150 [1] : vector<16x32xf32> to vector<16xf32>
      %379 = vector.shape_cast %378 : vector<16xf32> to vector<16x1xf32>
      %cst_151 = arith.constant 0.0322580636 : f32
      %380 = vector.broadcast %cst_151 : f32 to vector<16x1xf32>
      %381 = arith.mulf %379, %380 : vector<16x1xf32>
      %382 = vector.broadcast %374 : vector<16x1xf32> to vector<16x32xf32>
      %383 = arith.subf %364, %382 : vector<16x32xf32>
      %384 = vector.broadcast %369 : vector<1x32xf32> to vector<16x32xf32>
      %385 = arith.mulf %384, %383 : vector<16x32xf32>
      %386 = math.sqrt %381 : vector<16x1xf32>
      %cst_152 = arith.constant 9.99999997E-7 : f32
      %387 = vector.broadcast %cst_152 : f32 to vector<16x1xf32>
      %388 = arith.addf %386, %387 : vector<16x1xf32>
      %389 = vector.broadcast %388 : vector<16x1xf32> to vector<16x32xf32>
      %390 = arith.divf %385, %389 : vector<16x32xf32>
      %391 = vector.broadcast %370 : vector<1x32xf32> to vector<16x32xf32>
      %392 = arith.addf %390, %391 : vector<16x32xf32>
      %c0_153 = arith.constant 0 : index
      %c0_154 = arith.constant 0 : index
      %393 = vector.load %arg22[%c0_153, %c0_154] : memref<16x32xf32, #tpu.memory_space<vmem>>, vector<16x32xf32>
      tpu.vector_store %arg22[%c0_153, %c0_154], %392 {strides = array<i32>} : memref<16x32xf32, #tpu.memory_space<vmem>>, vector<16x32xf32>,
    } else {
    }
    return
  }
  func.func @transform_0(%arg0: i32, %arg1: i32) -> (i32, i32) {
    %c0_i32 = arith.constant 0 : i32
    %c0_i32_0 = arith.constant 0 : i32
    return %arg0, %c0_i32 : i32, i32
  }
  func.func @transform_1(%arg0: i32, %arg1: i32) -> (i32, i32, i32) {
    %c0_i32 = arith.constant 0 : i32
    %c0_i32_0 = arith.constant 0 : i32
    %c0_i32_1 = arith.constant 0 : i32
    return %arg0, %c0_i32, %c0_i32_0 : i32, i32, i32
  }
  func.func @transform_2(%arg0: i32, %arg1: i32) -> (i32, i32, i32) {
    %c0_i32 = arith.constant 0 : i32
    %c0_i32_0 = arith.constant 0 : i32
    %c0_i32_1 = arith.constant 0 : i32
    return %arg1, %c0_i32, %c0_i32_0 : i32, i32, i32
  }
  func.func @transform_3(%arg0: i32, %arg1: i32) -> (i32, i32, i32) {
    %c0_i32 = arith.constant 0 : i32
    %c0_i32_0 = arith.constant 0 : i32
    %c0_i32_1 = arith.constant 0 : i32
    return %arg1, %c0_i32, %c0_i32_0 : i32, i32, i32
  }
  func.func @transform_4(%arg0: i32, %arg1: i32) -> (i32, i32, i32) {
    %c0_i32 = arith.constant 0 : i32
    %c0_i32_0 = arith.constant 0 : i32
    %c0_i32_1 = arith.constant 0 : i32
    return %arg1, %c0_i32, %c0_i32_0 : i32, i32, i32
  }
  func.func @transform_5(%arg0: i32, %arg1: i32) -> (i32, i32, i32) {
    %c0_i32 = arith.constant 0 : i32
    %c0_i32_0 = arith.constant 0 : i32
    %c0_i32_1 = arith.constant 0 : i32
    return %arg1, %c0_i32, %c0_i32_0 : i32, i32, i32
  }
  func.func @transform_6(%arg0: i32, %arg1: i32) -> (i32, i32, i32) {
    %c0_i32 = arith.constant 0 : i32
    %c0_i32_0 = arith.constant 0 : i32
    %c0_i32_1 = arith.constant 0 : i32
    return %arg1, %c0_i32, %c0_i32_0 : i32, i32, i32
  }
  func.func @transform_7(%arg0: i32, %arg1: i32) -> (i32, i32, i32) {
    %c0_i32 = arith.constant 0 : i32
    %c0_i32_0 = arith.constant 0 : i32
    %c0_i32_1 = arith.constant 0 : i32
    return %arg1, %c0_i32, %c0_i32_0 : i32, i32, i32
  }
  func.func @transform_8(%arg0: i32, %arg1: i32) -> (i32, i32, i32) {
    %c0_i32 = arith.constant 0 : i32
    %c0_i32_0 = arith.constant 0 : i32
    %c0_i32_1 = arith.constant 0 : i32
    return %arg1, %c0_i32, %c0_i32_0 : i32, i32, i32
  }
  func.func @transform_9(%arg0: i32, %arg1: i32) -> (i32, i32, i32) {
    %c0_i32 = arith.constant 0 : i32
    %c0_i32_0 = arith.constant 0 : i32
    %c0_i32_1 = arith.constant 0 : i32
    return %arg1, %c0_i32, %c0_i32_0 : i32, i32, i32
  }
  func.func @transform_10(%arg0: i32, %arg1: i32) -> (i32, i32, i32) {
    %c0_i32 = arith.constant 0 : i32
    %c0_i32_0 = arith.constant 0 : i32
    %c0_i32_1 = arith.constant 0 : i32
    return %arg1, %c0_i32, %c0_i32_0 : i32, i32, i32
  }
  func.func @transform_11(%arg0: i32, %arg1: i32) -> (i32, i32, i32) {
    %c0_i32 = arith.constant 0 : i32
    %c0_i32_0 = arith.constant 0 : i32
    %c0_i32_1 = arith.constant 0 : i32
    return %arg1, %c0_i32, %c0_i32_0 : i32, i32, i32
  }
  func.func @transform_12(%arg0: i32, %arg1: i32) -> (i32, i32, i32) {
    %c0_i32 = arith.constant 0 : i32
    %c0_i32_0 = arith.constant 0 : i32
    %c0_i32_1 = arith.constant 0 : i32
    return %arg1, %c0_i32, %c0_i32_0 : i32, i32, i32
  }
  func.func @transform_13(%arg0: i32, %arg1: i32) -> (i32, i32, i32) {
    %c0_i32 = arith.constant 0 : i32
    %c0_i32_0 = arith.constant 0 : i32
    %c0_i32_1 = arith.constant 0 : i32
    return %arg1, %c0_i32, %c0_i32_0 : i32, i32, i32
  }
  func.func @transform_14(%arg0: i32, %arg1: i32) -> (i32, i32, i32) {
    %c0_i32 = arith.constant 0 : i32
    %c0_i32_0 = arith.constant 0 : i32
    %c0_i32_1 = arith.constant 0 : i32
    return %arg1, %c0_i32, %c0_i32_0 : i32, i32, i32
  }
  func.func @transform_15(%arg0: i32, %arg1: i32) -> (i32, i32, i32) {
    %c0_i32 = arith.constant 0 : i32
    %c0_i32_0 = arith.constant 0 : i32
    %c0_i32_1 = arith.constant 0 : i32
    return %arg1, %c0_i32, %c0_i32_0 : i32, i32, i32
  }
  func.func @transform_16(%arg0: i32, %arg1: i32) -> (i32, i32, i32) {
    %c0_i32 = arith.constant 0 : i32
    %c0_i32_0 = arith.constant 0 : i32
    %c0_i32_1 = arith.constant 0 : i32
    return %arg1, %c0_i32, %c0_i32_0 : i32, i32, i32
  }
  func.func @transform_17(%arg0: i32, %arg1: i32) -> (i32, i32, i32) {
    %c0_i32 = arith.constant 0 : i32
    %c0_i32_0 = arith.constant 0 : i32
    %c0_i32_1 = arith.constant 0 : i32
    return %arg1, %c0_i32, %c0_i32_0 : i32, i32, i32
  }
  func.func @transform_18(%arg0: i32, %arg1: i32) -> (i32, i32) {
    %c0_i32 = arith.constant 0 : i32
    %c0_i32_0 = arith.constant 0 : i32
    %c0_i32_1 = arith.constant 0 : i32
    return %c0_i32, %c0_i32_0 : i32, i32
  }
  func.func @transform_19(%arg0: i32, %arg1: i32) -> (i32, i32) {
    %c0_i32 = arith.constant 0 : i32
    %c0_i32_0 = arith.constant 0 : i32
    %c0_i32_1 = arith.constant 0 : i32
    return %c0_i32, %c0_i32_0 : i32, i32
  }
  func.func @transform_20(%arg0: i32, %arg1: i32) -> (i32, i32) {
    %c0_i32 = arith.constant 0 : i32
    %c0_i32_0 = arith.constant 0 : i32
    return %arg0, %c0_i32 : i32, i32
  }
}

</mosaic_0001>

<bundles_post_ra>
// kernel: tpu_custom_call.1
= control target key start
LH: loop header
LB: loop body
LE: loop exit
PB: predicated region body
PF: predicated region fallthrough
CT: control target
= control target key end

     0   :  { %s4811_s0 = inlined_call_operand.hbm [shape: f32[16,32], index: 0, kind: input, shape index: {}]   ;;  %s4812_s1 = inlined_call_operand.hbm [shape: f32[2,1,8], index: 1, kind: input, shape index: {}]   ;;  %s4813_s2 = inlined_call_operand.vmem [shape: f32[2,1,32], index: 2, kind: input, shape index: {}]   ;;  %s4814_s3 = inlined_call_operand.hbm [shape: f32[2,1,32], index: 3, kind: input, shape index: {}]   ;;  %s4815_s4 = inlined_call_operand.vmem [shape: f32[2,32,32], index: 4, kind: input, shape index: {}]   ;;  %s4816_s5 = inlined_call_operand.vmem [shape: f32[2,1,32], index: 5, kind: input, shape index: {}]   ;;  %s4817_s6 = inlined_call_operand.vmem [shape: f32[2,32,32], index: 6, kind: input, shape index: {}]   ;;  %s4818_s7 = inlined_call_operand.vmem [shape: f32[2,1,32], index: 7, kind: input, shape index: {}]   ;;  %s4819_s8 = inlined_call_operand.vmem [shape: f32[2,32,32], index: 8, kind: input, shape index: {}]   ;;  %s4820_s9 = inlined_call_operand.vmem [shape: f32[2,1,32], index: 9, kind: input, shape index: {}]   ;;  %s4821_s10 = inlined_call_operand.hbm [shape: f32[2,32,32], index: 10, kind: input, shape index: {}]   ;;  %s4822_s11 = inlined_call_operand.vmem [shape: f32[2,1,32], index: 11, kind: input, shape index: {}]   ;;  %s4823_s12 = inlined_call_operand.vmem [shape: f32[2,1,32], index: 12, kind: input, shape index: {}]   ;;  %s4824_s13 = inlined_call_operand.vmem [shape: f32[2,1,32], index: 13, kind: input, shape index: {}]   ;;  %s4825_s14 = inlined_call_operand.hbm [shape: f32[2,32,64], index: 14, kind: input, shape index: {}]   ;;  %s4826_s15 = inlined_call_operand.vmem [shape: f32[2,1,64], index: 15, kind: input, shape index: {}]   ;;  %s4827_s16 = inlined_call_operand.vmem [shape: f32[2,64,32], index: 16, kind: input, shape index: {}]   ;;  %s4828_s17 = inlined_call_operand.vmem [shape: f32[2,1,32], index: 17, kind: input, shape index: {}]   ;;  %s4829_s18 = inlined_call_operand.vmem [shape: f32[1,32], index: 18, kind: input, shape index: {}]   ;;  %s4830_s19 = inlined_call_operand.vmem [shape: f32[1,32], index: 19, kind: input, shape index: {}]   ;;  %s4831_s20 = inlined_call_operand.hbm [shape: f32[16,32], index: 20, kind: output, shape index: {}]  }
   0x1   :  { %4845 = sst [smem:[#allocation22_spill]] %s4811_s0 }
   0x2   :  { %4846 = sst [smem:[#allocation23_spill]] %s4812_s1 }
   0x3   :  { %4847 = sst [smem:[#allocation24_spill]] %s4813_s2 }
   0x4   :  { %4848 = sst [smem:[#allocation25_spill]] %s4814_s3 }
   0x5   :  { %4849 = sst [smem:[#allocation26_spill]] %s4815_s4 }
   0x6   :  { %4850 = sst [smem:[#allocation27_spill]] %s4817_s6 }
   0x7   :  { %4851 = sst [smem:[#allocation28_spill]] %s4819_s8 }
   0x8   :  { %4852 = sst [smem:[#allocation29_spill]] %s4820_s9 }
   0x9   :  { %4853 = sst [smem:[#allocation30_spill]] %s4821_s10 }
   0xa   :  { %4854 = sst [smem:[#allocation31_spill]] %s4822_s11 }
   0xb   :  { %4855 = sst [smem:[#allocation32_spill]] %s4823_s12 }
   0xc   :  { %4856 = sst [smem:[#allocation33_spill]] %s4824_s13 }
   0xd   :  { %4857 = sst [smem:[#allocation34_spill]] %s4825_s14 }
   0xe   :  { %4858 = sst [smem:[#allocation35_spill]] %s4826_s15 }
   0xf   :  { %4859 = sst [smem:[#allocation36_spill]] %s4827_s16 }
  0x10   :  { %4860 = sst [smem:[#allocation37_spill]] %s4828_s17 }
  0x11   :  { %4861 = sst [smem:[#allocation38_spill]] %s4829_s18 }
  0x12   :  { %4862 = sst [smem:[#allocation39_spill]] %s4830_s19 }
  0x13   :  { %4863 = sst [smem:[#allocation40_spill]] %s4831_s20 }
  0x14   :  { %25 = vsyncpa [#allocation3], 0 }
  0x15   :  { %26 = vsyncpa [#allocation6], 0 }
  0x16   :  { %27 = vsyncpa [#allocation4], 0  ;;  %s4250_s1 = smov 0   ;;  %s4252_s22 = smov 0  }
  0x17   :  { %s4254_s23 = smov 0   ;;  %s4256_s24 = smov 0  }
  0x18   :  { %s4258_s2 = smov 0   ;;  %s4260_s25 = smov 0  }
  0x19 LB: > { %4864 = sst [smem:[#allocation15_spill]] %s4107_s22  ;;  %s4279_s3 = sadd.s32 4294967295, %s4123_s25   ;;  %s4123_s25 = sphi %s4260_s25, %s33_s25   ;;  %s4119_s2 = sphi %s4258_s2, %s4918_s2   ;;  %s4115_s24 = sphi %s4256_s24, %s4917_s24   ;;  %s4111_s23 = sphi %s4254_s23, %s4916_s23   ;;  %s4107_s22 = sphi %s4252_s22, %s4915_s22   ;;  %s4103_s1 = sphi %s4250_s1, %s4914_s1  }
  0x1a   : > { %4865 = sst [smem:[#allocation16_spill]] %s4111_s23  ;;  %p143_p0 = scmp.ne.s32.totalorder %s4107_s22, %s4103_s1 }
  0x1b   : > { %4866 = sst [smem:[#allocation17_spill]] %s4119_s2  ;;  %p4838_p1 = scmp.eq.s32.totalorder %s4279_s3, 0 }
  0x1c   : > { %4867 = sst [smem:[#allocation18_spill]] %s4123_s25  ;;  %p3412_p2 = scmp.ge.s32.totalorder %s4123_s25, 1 }
  0x1d   : > { %4868 = sst [smem:[#allocation19_spill]] %s4279_s3  ;;  %p586_p3 = scmp.lt.s32.totalorder %s4123_s25, 3 }
  0x1e   : > { %p4287_p4 = por %p4838_p1, %p143_p0  ;;  %s4125_s28 = smov [#allocation2]  }
  0x1f   : > { %p4291_p5 = pnand %p3412_p2, %p586_p3  ;;  %s601_s4 = sshll.u32 %s4125_s28, 4  ;;  %s602_s4 = int_to_ptr.vmem [resolvable:$true] %s601_s4 }
  0x20   : > { %s42_s30 = sadd.s32 1, %s4119_s2  ;;  %s3912_s0 = scalar_lea.vmem %s602_s4, 256 }
  0x21   : > { %p3740_p6 = pneg %p4291_p5  ;;  %p3913_p9 = scmp.ne.s32.totalorder %s602_s4, %s3912_s0 }
  0x22   : > { %p3920_p12 = scmp.lt.s32.totalorder %s602_s4, %s602_s4  ;;  %p3921_p13 = scmp.lt.s32.totalorder %s3912_s0, %s3912_s0 }
  0x23   : > { %p4299_p7 = pnand %p3740_p6, %p4838_p1 }
  0x24   : > { %p3922_p0 = por %p3921_p13, %p3920_p12 }
  0x25   : > { %p3903_p8 = pneg %p4299_p7 }
  0x27   : > { %p3915_p10 = pnand %p3913_p9, %p3903_p8 }
  0x29   : > { %p3916_p11 = pneg %p3915_p10 }
  0x2b   : > { %p3923_p2 = pnand %p3922_p0, %p3916_p11 }
  0x2d   : > { %3926 = shalt.err (!%p3923_p2)
}
  0x2e   : > { %s4832_s21 = smov 128   ;;  %s4834_s1 = smov 8  }
  0x2f   : > { %s4872_s20 = sld [smem:[#allocation22_spill]]  ;;  %p43_p3 = scmp.ge.s32.totalorder %s42_s30, 2 }
  0x30   : > { %s130_s19 = sadd.s32 1, %s4111_s23  ;;  %p137_p6 = scmp.ne.s32.totalorder %s4111_s23, %s4107_s22 }
  0x31   : > { %p138_p9 = scmp.eq.s32.totalorder %s4123_s25, 0  ;;  %s4920_s30 = smov (%p43_p3, %s42_s30), 0 }
  0x32   : > { %4873 = sst [smem:[#allocation20_spill]] %s4920_s30  ;;  %p3759_p11 = scmp.lt.s32.totalorder %s4123_s25, 2 }
  0x33   : > { %p139_p10 = por %p138_p9, %p137_p6  ;;  %s127_s18 = ssub.s32 %s4119_s2, %s4920_s30 }
  0x34   : > { %s643_s16 = sand.u32 1, %s4123_s25   ;;  %p128_p12 = scmp.eq.s32.totalorder %s127_s18, 0 }
  0x35   : > { %3743 = dma.hbm_to_vmem [thread:$0]  (!%p4299_p7), %s4872_s20, 256, %s602_s4, [#allocation3], %s4832_s21, %s4832_s21, %s4834_s1  }
  0x36   : > { %s645_s17 = sand.u32 1, %s4111_s23   ;;  %s3416_s15 = sshll.u32 %s4119_s2, 4 }
  0x37   : > { %s4330_s13 = scalar_select %p128_p12, %s4111_s23, %s130_s19  }
  0x38   : > { %s4875_s28 = sld [smem:[#allocation25_spill]]  ;;  %s646_s4 = scalar_lea.vmem [#allocation7], %s645_s17 }
  0x39   : > { %4874 = sst [smem:[#allocation21_spill]] %s4330_s13  ;;  %s653_s0 = sshll.u32 %s646_s4, 4  ;;  %s654_s0 = int_to_ptr.vmem [resolvable:$true] %s653_s0 }
  0x3a   : > { %p4335_p13 = pnand %p3759_p11, %p139_p10  ;;  %s3417_s1 = sshll.u32 %s645_s17, 5 }
  0x3b   : > { %s4339_s30 = scalar_lea.sflag [#allocation3], %s643_s16  ;;  %s3940_s18 = scalar_lea.vmem %s654_s0, 16 }
  0x3c   : > { %p3929_p0 = pneg %p4335_p13  ;;  %p3941_p2 = scmp.ne.s32.totalorder %s654_s0, %s3940_s18 }
  0x3d   : > { %s4128_s11 = smov [#allocation7]  }
  0x3e   : > { %s651_s20 = scalar_lea.hbm %s4875_s28, %s3416_s15  ;;  %p3943_p3 = pnand %p3941_p2, %p3929_p0 }
  0x3f   : > { %s3945_s12 = sshll.u32 %s4128_s11, 4  ;;  %s3946_s12 = int_to_ptr.vmem [resolvable:$false] %s3945_s12 }
  0x40   : > { %p3944_p6 = pneg %p3943_p3  ;;  %s3947_s15 = scalar_lea.vmem %s3946_s12, 32 }
  0x41   : > { %p3948_p9 = scmp.lt.s32.totalorder %s654_s0, %s3946_s12  ;;  %p3949_p10 = scmp.lt.s32.totalorder %s3947_s15, %s3940_s18 }
  0x43   : > { %p3950_p11 = por %p3949_p10, %p3948_p9 }
  0x45   : > { %p3951_p12 = pnand %p3950_p11, %p3944_p6 }
  0x47   : > { %3954 = shalt.err (!%p3951_p12)
}
  0x48   : > { %3750 = dma.hbm_to_vmem [thread:$0]  (!%p4335_p13), %s651_s20, 16, %s654_s0, %s4339_s30  }
  0x49   : > { %s706_s16 = scalar_lea.vmem [#allocation8], %s3417_s1  ;;  %s745_s19 = scalar_lea.vmem [#allocation9], %s3417_s1 }
  0x4a   : > { %s713_s17 = sshll.u32 %s706_s16, 4  ;;  %s752_s28 = sshll.u32 %s745_s19, 4  ;;  %s714_s17 = int_to_ptr.vmem [resolvable:$true] %s713_s17  ;;  %s4349_s28 = int_to_ptr.vmem [resolvable:$true] %s752_s28 }
  0x4b   : > { %s4837_s4 = sshll.u32 %s4119_s2, 9  ;;  %s4877_s10 = sld [smem:[#allocation30_spill]] }
  0x4c   : > { %s3968_s15 = scalar_lea.vmem %s714_s17, 512  ;;  %s4129_s20 = smov [#allocation8]  }
  0x4d   : > { %p3969_p2 = scmp.ne.s32.totalorder %s714_s17, %s3968_s15  ;;  %s3973_s0 = sshll.u32 %s4129_s20, 4  ;;  %s3974_s0 = int_to_ptr.vmem [resolvable:$false] %s3973_s0 }
  0x4e   : > { %s3975_s16 = scalar_lea.vmem %s3974_s0, 1024  ;;  %p3976_p9 = scmp.lt.s32.totalorder %s714_s17, %s3974_s0 }
  0x4f   : > { %p3971_p3 = pnand %p3969_p2, %p3929_p0  ;;  %p3977_p10 = scmp.lt.s32.totalorder %s3975_s16, %s3968_s15 }
  0x51   : > { %s712_s12 = scalar_lea.hbm %s4877_s10, %s4837_s4  ;;  %p3972_p6 = pneg %p3971_p3 }
  0x52   : > { %p3978_p11 = por %p3977_p10, %p3976_p9 }
  0x54   : > { %p3979_p12 = pnand %p3978_p11, %p3972_p6 }
  0x56   : > { %3982 = shalt.err (!%p3979_p12)
}
  0x57   : > { %s4878_s1 = smov 8   ;;  %s4879_s19 = smov 128  }
  0x58   : > { %3753 = dma.hbm_to_vmem [thread:$0]  (!%p4335_p13), %s712_s12, 512, %s714_s17, %s4339_s30, %s4879_s19, %s4879_s19, %s4878_s1  }
  0x59   : > { %s4130_s18 = smov [#allocation5]  }
  0x5a   : > { %s617_s11 = sshll.u32 %s4130_s18, 4  ;;  %s618_s11 = int_to_ptr.vmem [resolvable:$true] %s617_s11 }
  0x5b   : > { %s3994_s4 = scalar_lea.vmem %s618_s11, 32  ;;  %p4002_p9 = scmp.lt.s32.totalorder %s618_s11, %s618_s11 }
  0x5c   : > { %p3995_p2 = scmp.ne.s32.totalorder %s618_s11, %s3994_s4  ;;  %p4003_p6 = scmp.lt.s32.totalorder %s3994_s4, %s3994_s4 }
  0x5e   : > { %p3997_p3 = pnand %p3995_p2, %p3903_p8  ;;  %p4004_p10 = por %p4003_p6, %p4002_p9 }
  0x60   : > { %p3998_p1 = pneg %p3997_p3 }
  0x62   : > { %p4005_p11 = pnand %p4004_p10, %p3998_p1 }
  0x64   : > { %4008 = shalt.err (!%p4005_p11)
}
  0x65   : > { %s4131_s15 = smov 16   ;;  %s4132_s17 = smov 1  }
  0x66   : > { %s4880_s0 = sld [smem:[#allocation23_spill]]  ;;  %s4881_s16 = sshll.u32 %s4119_s2, 9 }
  0x67   : > { %s4882_s14 = sld [smem:[#allocation34_spill]]  ;;  %s4022_s13 = scalar_lea.vmem %s4349_s28, 512 }
  0x68   : > { %p4023_p1 = scmp.ne.s32.totalorder %s4349_s28, %s4022_s13  ;;  %s4133_s23 = smov [#allocation9]  }
  0x69   : > { %s4027_s25 = sshll.u32 %s4133_s23, 4  ;;  %s4028_s25 = int_to_ptr.vmem [resolvable:$false] %s4027_s25 }
  0x6a   : > { %p4025_p8 = pnand %p4023_p1, %p3929_p0  ;;  %s4029_s9 = scalar_lea.vmem %s4028_s25, 1024 }
  0x6b   : > { %p4030_p2 = scmp.lt.s32.totalorder %s4349_s28, %s4028_s25  ;;  %p4031_p3 = scmp.lt.s32.totalorder %s4029_s9, %s4022_s13 }
  0x6c   : > { %3746 = dma.hbm_to_vmem [thread:$0]  (!%p4299_p7), %s4880_s0, 32, %s618_s11, [#allocation6], %s4131_s15, %s4131_s15, %s4132_s17  }
  0x6d   : > { %s751_s4 = scalar_lea.hbm %s4882_s14, %s4881_s16  ;;  %p4026_p12 = pneg %p4025_p8 }
  0x6e   : > { %p4032_p9 = por %p4031_p3, %p4030_p2 }
  0x70   : > { %p4033_p6 = pnand %p4032_p9, %p4026_p12 }
  0x72   : > { %4036 = shalt.err (!%p4033_p6)
}
  0x73   : > { %3756 = dma.hbm_to_vmem [thread:$0]  (!%p4335_p13), %s751_s4, 512, %s4349_s28, %s4339_s30, %s4879_s19, %s4879_s19, %s4878_s1  }
  0x74   : > { %784 = sbr.rel (%p4291_p5) target bundleno = 2825 (0xb09), region = 100  ;;  %p4883_p7 = scmp.eq.s32.totalorder (!%p4291_p5), %s4279_s3, 0 }
  0x79   : > { %4086 = dma.done.wait (%p4883_p7), [#allocation3], 256   ;;  %p4884_p0 = pmov %p4883_p7 }
  0x7b   : > { %4088 = vsyncadd (%p4884_p0), [#allocation3], 4294967040  ;;  %p4885_p10 = pmov %p4884_p0 }
  0x7c   : > { %p4886_p11 = pmov %p4884_p0 }
  0x7d   : > { %4090 = dma.done.wait (%p4885_p10), [#allocation6], 32  }
  0x7e   : > { %4092 = vsyncadd (%p4886_p11), [#allocation6], 4294967264  ;;  %s794_s9 = sand.u32 1, %s4279_s3   ;;  %s796_s10 = sand.u32 1, %s4107_s22  }
  0x7f   : > { %s795_s13 = scalar_lea.sflag [#allocation3], %s794_s9  ;;  %s4404_s23 = scalar_lea.vmem [#allocation7], %s796_s10 }
  0x80   : > { %4094 = dma.done.wait (%p4287_p4), %s795_s13, 1040  }
  0x81   : > { %4096 = vsyncadd (%p4287_p4), %s795_s13, 4294966256  ;;  %s3426_s25 = sshll.u32 %s796_s10, 5  ;;  %p925_p5 = scmp.lt.s32.totalorder %s4115_s24, 1 }
  0x82   : > { %s4888_s11 = sld [smem:[#allocation26_spill]]  ;;  %s4472_s0 = scalar_lea.vmem [#allocation8], %s3426_s25 }
  0x83   : > { %s4412_s27 = scalar_select %p925_p5, %s4115_s24, 1 }
  0x84   : > { %s4889_s6 = sld [smem:[#allocation27_spill]]  ;;  %p3436_p4 = scmp.ne.s32.totalorder %s4115_s24, 0 }
  0x85   : > { %s3492_s28 = sshll.u32 %s4412_s27, 5  ;;  %s4890_s8 = sld [smem:[#allocation28_spill]] }
  0x86   : > { %s4892_s20 = sld [smem:[#allocation31_spill]] }
  0x87   : > { %s4894_s9 = sld [smem:[#allocation33_spill]] }
  0x88   : > { %s4422_s15 = scalar_lea.vmem %s4888_s11, %s3492_s28  ;;  %s4896_s1 = sld [smem:[#allocation37_spill]] }
  0x8a   : > { %s4431_s18 = scalar_lea.vmem %s4889_s6, %s3492_s28  ;;  %s4893_s6 = sld [smem:[#allocation32_spill]] }
  0x8b   : > { %s4440_s30 = scalar_lea.vmem %s4890_s8, %s3492_s28  ;;  %s4895_s28 = sld [smem:[#allocation35_spill]] }
  0x8c   : > { %s954_s26 = scalar_lea.vmem %s4892_s20, %s4412_s27  ;;  %s3495_s8 = sshll.u32 %s4412_s27, 6 }
  0x8d   : > { %s960_s10 = scalar_lea.vmem %s4894_s9, %s4412_s27  ;;  %s4897_s20 = sld [smem:[#allocation36_spill]] }
  0x8e   : > { %s971_s19 = scalar_lea.vmem %s4896_s1, %s4412_s27 }
  0x8f   : > { %976 = sbr.rel (%p3436_p4) target bundleno = 150 (0x96), region = 124 }
  0x90   : > { %s957_s14 = scalar_lea.vmem %s4893_s6, %s4412_s27  ;;  %s4474_s6 = scalar_lea.vmem [#allocation9], %s3426_s25 }
  0x91   : > { %s963_s29 = scalar_lea.vmem %s4895_s28, %s4412_s27 }
  0x93   : > { %s4470_s12 = scalar_lea.vmem %s4897_s20, %s3495_s8 }
  0x94   : > { %v977_v0 = vld [vmem:[#allocation2] sm:$0xff]  ;;  %vm979_vm0 = vcmask 261120   ;;  %v978_v1 = vld [vmem:[#allocation2 + $0x8] sm:$0xff] }
  0x95   : > { %980 = vst.msk [vmem:[#allocation10] sm:$0xff] %vm979_vm0, %v977_v0  ;;  %981 = vst.msk [vmem:[#allocation10 + $0x8] sm:$0xff] %vm979_vm0, %v978_v1 }
  0x96 PF: > { %vm986_vm1 = vcmask 261120   ;;  %v1047_v16 = vld [vmem:[%s4422_s15 + $0x18] sm:$0xff]  ;;  %v1046_v18 = vld [vmem:[%s4422_s15 + $0x10] sm:$0xff]  ;;  %v1045_v20 = vld [vmem:[%s4422_s15 + $0x8] sm:$0xff]  ;;  %s4898_s2 = sld [smem:[#allocation24_spill]]  ;;  %v4134_v54 = vmov 0.0   ;;  %s4902_s16 = scalar_lea.vmem %s4816_s5, %s4412_s27 }
  0x97   : > { %v1225_v17 = vld [vmem:[%s4440_s30 + $0x18] sm:$0xff]  ;;  %3568 = vmatprep.subr.mxu1 %v1047_v16  ;;  %v1224_v19 = vld [vmem:[%s4440_s30 + $0x10] sm:$0xff]  ;;  %v1223_v21 = vld [vmem:[%s4440_s30 + $0x8] sm:$0xff]  ;;  %vm4135_vm6 = vmmov 0   ;;  %s4136_s4 = smov 120   ;;  %s4903_s28 = scalar_lea.vmem %s4818_s7, %s4412_s27  ;;  %vm1311_vm7 = vcmask 64512  }
  0x98   : > { %3590 = vmatprep.subr.mxu0 %v1225_v17  ;;  %3569 = vmatpush3.msra.mxu1 %v1047_v16  ;;  %v1044_v22 = vld [vmem:[%s4422_s15] sm:$0xff]  ;;  %v1139_v24 = vld [vmem:[%s4431_s18 + $0x18] sm:$0xff]  ;;  %v1138_v51 = vld [vmem:[%s4431_s18 + $0x10] sm:$0xff]  ;;  %s4900_s15 = sld [smem:[#allocation29_spill]]  ;;  %s4137_s21 = smov 112   ;;  %vm2019_vm10 = vcmask 130048  }
  0x99   : > { %3591 = vmatpush3.msra.mxu0 %v1225_v17  ;;  %3570 = vmatprep.subr.mxu1 %v1046_v18  ;;  %v1222_v23 = vld [vmem:[%s4440_s30] sm:$0xff]  ;;  %v1137_v52 = vld [vmem:[%s4431_s18 + $0x8] sm:$0xff]  ;;  %s4138_s1 = smov 104   ;;  %s4140_s17 = smov 8   ;;  %vm2021_vm11 = vcmask 195584   ;;  %vm2990_vm0 = vcmask 523264  }
  0x9a   : > { %3592 = vmatprep.subr.mxu0 %v1224_v19  ;;  %3571 = vmatpush3.msra.mxu1 %v1046_v18  ;;  %v3438_v44 = vld [vmem:[%s4404_s23] ss:$0 sm:$0xff]  ;;  %s4141_s20 = smov 16   ;;  %s4142_s8 = smov 24  }
  0x9b   : > { %3593 = vmatpush3.msra.mxu0 %v1224_v19  ;;  %3572 = vmatprep.subr.mxu1 %v1045_v20  ;;  %v1136_v53 = vld [vmem:[%s4431_s18] sm:$0xff]  ;;  %p3483_p13 = scmp.ne.s32.totalorder %s4115_s24, 1 }
  0x9c   : > { %v4477_v2 = vld [vmem:[#allocation10] sm:$0xff]  ;;  %v4479_v3 = vld [vmem:[#allocation10 + $0x8] sm:$0xff]  ;;  %3573 = vmatpush3.msra.mxu1 %v1045_v20  ;;  %3594 = vmatprep.subr.mxu0 %v1223_v21  ;;  %s4899_s3 = scalar_lea.vmem %s4898_s2, %s4412_s27  ;;  %v1390_v20 = vlaneseq }
  0x9d   : > { %v987_v4 = vsel %vm986_vm1, %v4477_v2, 0.0  ;;  %v990_v5 = vsel %vm986_vm1, %v4479_v3, 0.0  ;;  %3574 = vmatprep.subr.mxu1 %v1044_v22  ;;  %3595 = vmatpush3.msra.mxu0 %v1223_v21  ;;  %v3437_v41 = vld [vmem:[%s4899_s3] ss:$0 sm:$0xff]  ;;  %v1308_v21 = vld [vmem:[#allocation5] sm:$0x1] }
  0x9e   : > { %988 = vadd.xlane.f32.xlu0 %v987_v4  ;;  %3575 = vmatpush3.msra.mxu1 %v1044_v22  ;;  %s4901_s18 = scalar_lea.vmem %s4900_s15, %s4412_s27  ;;  %v3439_v59 = vld [vmem:[%s4902_s16] ss:$0 sm:$0xff]  ;;  %v1391_v22 = vshrl.u32 %v1390_v20, 7  ;;  %vm1309_vm8 = vcmp.gt.f32.partialorder %v1308_v21, 0.0 }
  0x9f   : > { %3596 = vmatprep.subr.mxu0 %v1222_v23  ;;  %3579 = vmatprep.subr.mxu1 %v1139_v24  ;;  %v3445_v55 = vld [vmem:[%s4901_s18] ss:$0 sm:$0xff] }
  0xa0   : > { %3597 = vmatpush3.msra.mxu0 %v1222_v23  ;;  %v3442_v63 = vld [vmem:[%s4903_s28] ss:$0 sm:$0xff]  ;;  %v1392_v23 = vsub.s32 0, %v1391_v22 }
  0xa1   : > { %3611 = vmatprep.subr.mxu0 %v4134_v54 }
  0xa2   : > { %991 = vadd.xlane.f32.xlu0 %v990_v5 }
 0x127   : > { %v989_v6 = vpop.xlane.xlu0 %988 }
 0x128   : > { %v994_v7 = vmul.f32 0.03125, %v989_v6 }
 0x12a   : > { %v996_v8 = vsub.f32 %v4477_v2, %v994_v7 }
 0x12b   : > { %v992_v9 = vpop.xlane.xlu0 %991 }
 0x12c   : > { %v995_v10 = vmul.f32 0.03125, %v992_v9  ;;  %v998_v11 = vmul.f32 %v996_v8, %v996_v8  ;;  %v1014_v42 = vmul.f32 %v3437_v41, %v996_v8 }
 0x12e   : > { %v997_v12 = vsub.f32 %v4479_v3, %v995_v10  ;;  %v1000_v13 = vsel %vm986_vm1, %v998_v11, 0.0 }
 0x12f   : > { %1001 = vadd.xlane.f32.xlu1 %v1000_v13 }
 0x130   : > { %v999_v14 = vmul.f32 %v997_v12, %v997_v12  ;;  %v1015_v46 = vmul.f32 %v3437_v41, %v997_v12 }
 0x132   : > { %v1003_v15 = vsel %vm986_vm1, %v999_v14, 0.0 }
 0x133   : > { %1004 = vadd.xlane.f32.xlu1 %v1003_v15 }
 0x1b8   : > { %v1002_v25 = vpop.xlane.xlu1 %1001 }
 0x1b9   : > { %v1006_v26 = vmul.f32 0.032258064, %v1002_v25 }
 0x1bb   : > { %3829 = vrsqrt.f32 %v1006_v26  ;;  %vm1018_vm2 = vcmp.eq.f32.partialorder %v1006_v26, inf  ;;  %v1021_v31 = vand.u32 2147483648, %v1006_v26  ;;  %vm1020_vm3 = vcmp.eq.f32.partialorder %v1006_v26, 0.0 }
 0x1bc   : > { %v1005_v27 = vpop.xlane.xlu1 %1004 }
 0x1bd   : > { %v1007_v28 = vmul.f32 0.032258064, %v1005_v27 }
 0x1bf   : > { %3831 = vrsqrt.f32 %v1007_v28  ;;  %vm1025_vm4 = vcmp.eq.f32.partialorder %v1007_v28, inf  ;;  %v1028_v37 = vand.u32 2147483648, %v1007_v28  ;;  %vm1027_vm5 = vcmp.eq.f32.partialorder %v1007_v28, 0.0 }
 0x1c8   : > { %v3830_v29 = vpop.eup %3829 }
 0x1c9   : > { %v1017_v30 = vmul.f32 %v3830_v29, %v1006_v26 }
 0x1cb   : > { %v1019_v32 = vsel %vm1018_vm2, %v1006_v26, %v1017_v30 }
 0x1cc   : > { %v3832_v33 = vpop.eup %3831  ;;  %v1022_v34 = vsel %vm1020_vm3, %v1021_v31, %v1019_v32 }
 0x1cd   : > { %v1024_v35 = vmul.f32 %v3832_v33, %v1007_v28  ;;  %v1030_v36 = vadd.f32 1e-06, %v1022_v34 }
 0x1cf   : > { %v1026_v38 = vsel %vm1025_vm4, %v1007_v28, %v1024_v35  ;;  %3833 = vrcp.f32 %v1030_v36  ;;  %v2024_v35 = vld [vmem:[#allocation5 + $0x1] sm:$0x1] }
 0x1d0   : > { %v1029_v39 = vsel %vm1027_vm5, %v1028_v37, %v1026_v38  ;;  %vm2025_vm9 = vcmp.gt.f32.partialorder %v2024_v35, 0.0 }
 0x1d1   : > { %v1031_v40 = vadd.f32 1e-06, %v1029_v39 }
 0x1d3   : > { %3835 = vrcp.f32 %v1031_v40 }
 0x1dc   : > { %v3834_v43 = vpop.eup %3833 }
 0x1dd   : > { %v1033_v45 = vmul.f32 %v3834_v43, %v1014_v42 }
 0x1df   : > { %v1042_v47 = vadd.f32 %v3438_v44, %v1033_v45 }
 0x1e0   : > { %v3836_v48 = vpop.eup %3835 }
 0x1e1   : > { %v1035_v49 = vmul.f32 %v3836_v48, %v1015_v46  ;;  %3576 = vmatprep.mubr.msk.f32.mxu1 %vm986_vm1, %v1042_v47  ;;  %3598 = vmatprep.mubr.msk.f32.mxu0 %vm986_vm1, %v1042_v47 }
 0x1e3   : > { %v1043_v50 = vadd.f32 %v3438_v44, %v1035_v49 }
 0x1e5   : > { %3577 = vmatmul.mubr.msk.f32.vlgmr.msra.gmra.mxu1 %vm986_vm1, %v1043_v50  ;;  %3599 = vmatmul.mubr.msk.f32.vlgmr.msra.gmra.mxu0 %vm986_vm1, %v1043_v50 }
 0x1e6   : > { %3580 = vmatpush3.msra.mxu1 %v1139_v24  ;;  %3587 = vmatprep.mubr.msk.f32.mxu1 %vm986_vm1, %v1042_v47  ;;  %v4139_v24 = vmov -1e+09  }
 0x1e7   : > { %3581 = vmatprep.subr.mxu1 %v1138_v51  ;;  %3613 = vmatprep.mubr.msk.f32.mxu0 %vm4135_vm6, %v4134_v54  ;;  %v1310_v25 = vsel %vm1309_vm8, 0.0, %v4139_v24  ;;  %v2026_v43 = vsel %vm2025_vm9, 0.0, %v4139_v24 }
 0x1e8   : > { %3582 = vmatpush3.msra.mxu1 %v1138_v51  ;;  %v1393_v26 = vrot.slane %v1310_v25, %v1392_v23  ;;  %v2108_v48 = vrot.slane %v2026_v43, %v1392_v23 }
 0x1e9   : > { %3583 = vmatprep.subr.mxu1 %v1137_v52 }
 0x1ea   : > { %3584 = vmatpush3.msra.mxu1 %v1137_v52 }
 0x1eb   : > { %3585 = vmatprep.subr.mxu1 %v1136_v53 }
 0x1ec   : > { %3586 = vmatpush3.msra.mxu1 %v1136_v53 }
 0x1ed   : > { %3588 = vmatmul.mubr.msk.f32.vlgmr.msra.gmra.mxu1 %vm986_vm1, %v1043_v50  ;;  %3601 = vmatprep.subr.mxu1 %v4134_v54 }
 0x1ee   : > { %3603 = vmatprep.mubr.msk.f32.mxu1 %vm4135_vm6, %v4134_v54 }
 0x2a5   : > { %v3578_v56 = vpop.f32.mrf.mxu1  ;;  %v3600_v57 = vpop.f32.mrf.mxu0 }
 0x2a6   : > { %v4524_v58 = vadd.f32 %v3600_v57, %v3445_v55  ;;  %v1133_v7 = vadd.f32 %v3578_v56, %v3439_v59 }
 0x2a7   : > { %v1127_v60 = vpop.f32.mrf.mxu1  ;;  %v1299_v4 = vpop.f32.mrf.mxu0 }
 0x2a8   : > { %v1128_v61 = vadd.f32 %v3439_v59, %v1127_v60  ;;  %v4541_v5 = vadd.f32 %v3445_v55, %v1299_v4 }
 0x2aa   : > { %1486 = vrot.lane.b32.xlu1 %v1128_v61, %s4136_s4 }
 0x2ad   : > { %v3589_v62 = vpop.f32.mrf.mxu1 }
 0x2ae   : > { %v1219_v6 = vadd.f32 %v3589_v62, %v3442_v63 }
 0x2af   : > { %v1213_v0 = vpop.f32.mrf.mxu1 }
 0x2b0   : > { %v1214_v1 = vadd.f32 %v3442_v63, %v1213_v0 }
 0x2b2   : > { %1488 = vrot.lane.b32.xlu0 %v1214_v1, %s4136_s4  ;;  %3602 = vmatpush3.xpose.msk.msra.mxu1 %vm1311_vm7, %v1214_v1 }
 0x2b3   : > { %1662 = vrot.lane.b32.xlu1 %v1214_v1, %s4137_s21  ;;  %3606 = vmatprep.subr.mxu1 %v4134_v54 }
 0x2b5   : > { %3604 = vmatmul.mubr.msk.f32.vlgmr.msra.gmra.mxu1 %vm1311_vm7, %v1128_v61 }
 0x2b6   : > { %1835 = vrot.lane.b32.xlu0 %v1214_v1, %s4138_s1  ;;  %3607 = vmatpush3.msra.mxu1 %v4541_v5 }
 0x2b7   : > { %1660 = vrot.lane.b32.xlu1 %v1128_v61, %s4137_s21  ;;  %3608 = vmatprep.mubr.msk.f32.mxu1 %vm4135_vm6, %v4134_v54 }
 0x2b8   : > { %3616 = vmatprep.subr.mxu1 %v4134_v54 }
 0x2ba   : > { %2203 = vrot.lane.b32.xlu0 %v1219_v6, %s4136_s4 }
 0x2bb   : > { %1833 = vrot.lane.b32.xlu1 %v1128_v61, %s4138_s1 }
 0x2be   : > { %2377 = vrot.lane.b32.xlu0 %v1219_v6, %s4137_s21 }
 0x2bf   : > { %2201 = vrot.lane.b32.xlu1 %v1133_v7, %s4136_s4 }
 0x2c2   : > { %2550 = vrot.lane.b32.xlu0 %v1219_v6, %s4138_s1 }
 0x2c3   : > { %2375 = vrot.lane.b32.xlu1 %v1133_v7, %s4137_s21 }
 0x2c7   : > { %2548 = vrot.lane.b32.xlu1 %v1133_v7, %s4138_s1 }
 0x31c   : > { %v1487_v8 = vpop.permute.xlu1 %1486 }
 0x324   : > { %v1489_v9 = vpop.permute.xlu0 %1488 }
 0x325   : > { %v1663_v10 = vpop.permute.xlu1 %1662  ;;  %3612 = vmatpush3.xpose.msk.msra.mxu0 %vm1311_vm7, %v1489_v9 }
 0x326   : > { %3621 = vmatprep.subr.mxu0 %v4134_v54 }
 0x328   : > { %3614 = vmatmul.mubr.msk.f32.vlgmr.msra.gmra.mxu0 %vm1311_vm7, %v1487_v8  ;;  %v1836_v12 = vpop.permute.xlu0 %1835 }
 0x329   : > { %v1661_v11 = vpop.permute.xlu1 %1660  ;;  %3622 = vmatpush3.xpose.msk.msra.mxu0 %vm1311_vm7, %v1663_v10  ;;  %3623 = vmatprep.mubr.msk.f32.mxu0 %vm4135_vm6, %v4134_v54 }
 0x32a   : > { %3631 = vmatprep.subr.mxu0 %v4134_v54 }
 0x32c   : > { %3624 = vmatmul.mubr.msk.f32.vlgmr.msra.gmra.mxu0 %vm1311_vm7, %v1661_v11  ;;  %v2204_v14 = vpop.permute.xlu0 %2203 }
 0x32d   : > { %v1834_v13 = vpop.permute.xlu1 %1833  ;;  %3632 = vmatpush3.xpose.msk.msra.mxu0 %vm1311_vm7, %v1836_v12  ;;  %3633 = vmatprep.mubr.msk.f32.mxu0 %vm4135_vm6, %v4134_v54 }
 0x32e   : > { %3641 = vmatprep.subr.mxu0 %v4134_v54 }
 0x330   : > { %3634 = vmatmul.mubr.msk.f32.vlgmr.msra.gmra.mxu0 %vm1311_vm7, %v1834_v13  ;;  %v2378_v16 = vpop.permute.xlu0 %2377 }
 0x331   : > { %3642 = vmatpush3.xpose.msk.msra.mxu0 %vm1311_vm7, %v1219_v6  ;;  %3643 = vmatprep.mubr.msk.f32.mxu0 %vm4135_vm6, %v4134_v54  ;;  %v2202_v15 = vpop.permute.xlu1 %2201 }
 0x332   : > { %3651 = vmatprep.subr.mxu0 %v4134_v54 }
 0x334   : > { %3644 = vmatmul.mubr.msk.f32.vlgmr.msra.gmra.mxu0 %vm1311_vm7, %v1133_v7  ;;  %v2551_v18 = vpop.permute.xlu0 %2550 }
 0x335   : > { %3652 = vmatpush3.xpose.msk.msra.mxu0 %vm1311_vm7, %v2204_v14  ;;  %3653 = vmatprep.mubr.msk.f32.mxu0 %vm4135_vm6, %v4134_v54  ;;  %v2376_v17 = vpop.permute.xlu1 %2375 }
 0x336   : > { %3661 = vmatprep.subr.mxu0 %v4134_v54 }
 0x338   : > { %3654 = vmatmul.mubr.msk.f32.vlgmr.msra.gmra.mxu0 %vm1311_vm7, %v2202_v15 }
 0x339   : > { %3662 = vmatpush3.xpose.msk.msra.mxu0 %vm1311_vm7, %v2378_v16  ;;  %3663 = vmatprep.mubr.msk.f32.mxu0 %vm4135_vm6, %v4134_v54  ;;  %v2549_v19 = vpop.permute.xlu1 %2548 }
 0x33a   : > { %3671 = vmatprep.subr.mxu0 %v4134_v54 }
 0x33c   : > { %3664 = vmatmul.mubr.msk.f32.vlgmr.msra.gmra.mxu0 %vm1311_vm7, %v2376_v17 }
 0x33d   : > { %3672 = vmatpush3.xpose.msk.msra.mxu0 %vm1311_vm7, %v2551_v18  ;;  %3673 = vmatprep.mubr.msk.f32.mxu0 %vm4135_vm6, %v4134_v54 }
 0x340   : > { %3674 = vmatmul.mubr.msk.f32.vlgmr.msra.gmra.mxu0 %vm1311_vm7, %v2549_v19 }
 0x375   : > { %v1384_v27 = vpop.f32.mrf.mxu1 }
 0x376   : > { %v1388_v28 = vmul.f32 0.35355338, %v1384_v27 }
 0x377   : > { %v3605_v29 = vpop.f32.mrf.mxu1 }
 0x378   : > { %v1395_v30 = vadd.f32 %v1393_v26, %v1388_v28 }
 0x37a   : > { %v1396_v31 = vsel %vm1311_vm7, %v1395_v30, -inf }
 0x37b   : > { %1397 = vmax.xlane.f32.xlu0 %v1396_v31 }
 0x3e8   : > { %v1560_v32 = vpop.f32.mrf.mxu0 }
 0x3e9   : > { %v1564_v33 = vmul.f32 0.35355338, %v1560_v32 }
 0x3ea   : > { %v3615_v34 = vpop.f32.mrf.mxu0 }
 0x3eb   : > { %v1565_v36 = vadd.f32 %v1564_v33, %v1393_v26 }
 0x3ec   : > { %v1734_v37 = vpop.f32.mrf.mxu0 }
 0x3ed   : > { %v1738_v38 = vmul.f32 0.35355338, %v1734_v37  ;;  %v1566_v39 = vsel %vm1311_vm7, %v1565_v36, -inf }
 0x3ee   : > { %1567 = vmax.xlane.f32.xlu1 %v1566_v39  ;;  %v3625_v40 = vpop.f32.mrf.mxu0 }
 0x3ef   : > { %v1739_v41 = vadd.f32 %v1738_v38, %v1393_v26 }
 0x3f0   : > { %v1907_v42 = vpop.f32.mrf.mxu0 }
 0x3f1   : > { %v1911_v44 = vmul.f32 0.35355338, %v1907_v42  ;;  %v1740_v45 = vsel %vm1311_vm7, %v1739_v41, -inf }
 0x3f2   : > { %v3635_v46 = vpop.f32.mrf.mxu0  ;;  %1741 = vmax.xlane.f32.xlu0 %v1740_v45 }
 0x3f3   : > { %v1912_v47 = vadd.f32 %v1911_v44, %v1393_v26 }
 0x3f4   : > { %v2099_v49 = vpop.f32.mrf.mxu0 }
 0x3f5   : > { %v2103_v50 = vmul.f32 0.35355338, %v2099_v49  ;;  %v1913_v51 = vsel %vm1311_vm7, %v1912_v47, -inf }
 0x3f6   : > { %v3645_v52 = vpop.f32.mrf.mxu0  ;;  %1914 = vmax.xlane.f32.xlu0 %v1913_v51 }
 0x3f7   : > { %v2110_v53 = vadd.f32 %v2108_v48, %v2103_v50 }
 0x3f8   : > { %v2275_v55 = vpop.f32.mrf.mxu0 }
 0x3f9   : > { %v2111_v56 = vsel %vm1311_vm7, %v2110_v53, -inf  ;;  %v2279_v6 = vmul.f32 0.35355338, %v2275_v55 }
 0x3fa   : > { %v3655_v57 = vpop.f32.mrf.mxu0  ;;  %2112 = vmax.xlane.f32.xlu0 %v2111_v56 }
 0x3fb   : > { %v2280_v9 = vadd.f32 %v2279_v6, %v2108_v48 }
 0x3fc   : > { %v2449_v59 = vpop.f32.mrf.mxu0 }
 0x3fd   : > { %v2453_v7 = vmul.f32 0.35355338, %v2449_v59  ;;  %v2281_v10 = vsel %vm1311_vm7, %v2280_v9, -inf }
 0x3fe   : > { %v3665_v60 = vpop.f32.mrf.mxu0 }
 0x3ff   : > { %1754 = vrot.lane.b32.xlu1 %v4541_v5, %s4137_s21  ;;  %v4614_v12 = vadd.f32 %v2453_v7, %v2108_v48 }
 0x400   : > { %v2622_v61 = vpop.f32.mrf.mxu0 }
 0x401   : > { %v2626_v8 = vmul.f32 0.35355338, %v2622_v61  ;;  %v2455_v13 = vsel %vm1311_vm7, %v4614_v12, -inf }
 0x402   : > { %v3675_v62 = vpop.f32.mrf.mxu0 }
 0x403   : > { %1927 = vrot.lane.b32.xlu1 %v4541_v5, %s4138_s1  ;;  %v4612_v11 = vadd.f32 %v2626_v8, %v2108_v48 }
 0x404   : > { %v4598_v63 = vpop.xlane.xlu0 %1397 }
 0x405   : > { %v1402_v0 = vsub.f32 %v1395_v30, %v4598_v63 }
 0x407   : > { %v1403_v1 = vmul.f32 1.442695, %v1402_v0  ;;  %2296 = vrot.lane.b32.xlu1 %v4524_v58, %s4136_s4 }
 0x409   : > { %3837 = vpow2.f32 %v1403_v1 }
 0x410   : > { %1581 = vrot.lane.b32.xlu0 %v4541_v5, %s4136_s4  ;;  %v2628_v5 = vsel %vm1311_vm7, %v4612_v11, -inf  ;;  %s4910_s4 = sld [smem:[#allocation39_spill]] (!%p3483_p13) }
 0x416   : > { %v4605_v4 = vpop.eup %3837 }
 0x417   : > { %3609 = vmatmul.mubr.msk.f32.vlgmr.msra.gmra.mxu1 %vm1311_vm7, %v4605_v4  ;;  %v1406_v55 = vsel %vm1311_vm7, %v4605_v4, 0.0 }
 0x418   : > { %3618 = vmatprep.mubr.msk.f32.mxu1 %vm4135_vm6, %v4134_v54 }
 0x42b   : > { %2282 = vmax.xlane.f32.xlu1 %v2281_v10 }
 0x42f   : > { %2629 = vmax.xlane.f32.xlu1 %v2628_v5  ;;  %2456 = vmax.xlane.f32.xlu0 %v2455_v13 }
 0x440   : > { %2642 = vrot.lane.b32.xlu1 %v4524_v58, %s4138_s1 }
 0x445   : > { %2469 = vrot.lane.b32.xlu0 %v4524_v58, %s4137_s21 }
 0x477   : > { %v4624_v14 = vpop.xlane.xlu1 %1567 }
 0x478   : > { %v1572_v15 = vsub.f32 %v1565_v36, %v4624_v14  ;;  %v1569_v59 = vsub.f32 -inf, %v4624_v14 }
 0x47a   : > { %v1573_v16 = vmul.f32 1.442695, %v1572_v15  ;;  %v1570_v60 = vmul.f32 1.442695, %v1569_v59  ;;  %v2739_v59 = vld [vmem:[%s4472_s0 + $0x18] sm:$0xff] }
 0x47b   : > { %v4627_v17 = vpop.xlane.xlu0 %1741  ;;  %v1755_v27 = vpop.permute.xlu1 %1754  ;;  %3681 = vmatprep.subr.mxu0 %v2739_v59 }
 0x47c   : > { %v1746_v18 = vsub.f32 %v1739_v41, %v4627_v17  ;;  %3839 = vpow2.f32 %v1573_v16  ;;  %v1743_v61 = vsub.f32 -inf, %v4627_v17  ;;  %3682 = vmatpush3.msra.mxu0 %v2739_v59  ;;  %v2888_v59 = vld [vmem:[%s4474_s6] sm:$0xff] }
 0x47e   : > { %v1747_v19 = vmul.f32 1.442695, %v1746_v18  ;;  %v1744_v62 = vmul.f32 1.442695, %v1743_v61 }
 0x47f   : > { %v4630_v20 = vpop.xlane.xlu0 %1914  ;;  %v1928_v31 = vpop.permute.xlu1 %1927 }
 0x480   : > { %v1919_v21 = vsub.f32 %v1912_v47, %v4630_v20  ;;  %3841 = vpow2.f32 %v1747_v19 }
 0x482   : > { %v1920_v22 = vmul.f32 1.442695, %v1919_v21 }
 0x483   : > { %v4633_v23 = vpop.xlane.xlu0 %2112  ;;  %v2297_v36 = vpop.permute.xlu1 %2296 }
 0x484   : > { %v2117_v24 = vsub.f32 %v2110_v53, %v4633_v23  ;;  %3843 = vpow2.f32 %v1920_v22  ;;  %v2114_v10 = vsub.f32 -inf, %v4633_v23 }
 0x486   : > { %v2118_v25 = vmul.f32 1.442695, %v2117_v24  ;;  %v2115_v14 = vmul.f32 1.442695, %v2114_v10 }
 0x487   : > { %v1582_v26 = vpop.permute.xlu0 %1581 }
 0x488   : > { %3617 = vmatpush3.msra.mxu1 %v1582_v26  ;;  %3845 = vpow2.f32 %v2118_v25 }
 0x489   : > { %3626 = vmatprep.subr.mxu1 %v4134_v54  ;;  %v3840_v28 = vpop.eup %3839 }
 0x48a   : > { %3619 = vmatmul.mubr.msk.f32.vlgmr.msra.gmra.mxu1 %vm1311_vm7, %v3840_v28  ;;  %v1576_v29 = vsel %vm1311_vm7, %v3840_v28, 0.0 }
 0x48b   : > { %3627 = vmatpush3.msra.mxu1 %v1755_v27  ;;  %1577 = vadd.xlane.f32.xlu0 %v1576_v29 }
 0x48c   : > { %3628 = vmatprep.mubr.msk.f32.mxu1 %vm4135_vm6, %v4134_v54  ;;  %3636 = vmatprep.subr.mxu1 %v4134_v54 }
 0x48d   : > { %v3842_v30 = vpop.eup %3841 }
 0x48e   : > { %3629 = vmatmul.mubr.msk.f32.vlgmr.msra.gmra.mxu1 %vm1311_vm7, %v3842_v30  ;;  %v1750_v32 = vsel %vm1311_vm7, %v3842_v30, 0.0 }
 0x48f   : > { %3637 = vmatpush3.msra.mxu1 %v1928_v31  ;;  %1751 = vadd.xlane.f32.xlu1 %v1750_v32 }
 0x490   : > { %3638 = vmatprep.mubr.msk.f32.mxu1 %vm4135_vm6, %v4134_v54  ;;  %3646 = vmatprep.subr.mxu1 %v4134_v54 }
 0x491   : > { %v3844_v33 = vpop.eup %3843 }
 0x492   : > { %3639 = vmatmul.mubr.msk.f32.vlgmr.msra.gmra.mxu1 %vm1311_vm7, %v3844_v33  ;;  %v1923_v34 = vsel %vm1311_vm7, %v3844_v33, 0.0 }
 0x493   : > { %3647 = vmatpush3.msra.mxu1 %v4524_v58  ;;  %1924 = vadd.xlane.f32.xlu0 %v1923_v34 }
 0x494   : > { %3648 = vmatprep.mubr.msk.f32.mxu1 %vm4135_vm6, %v4134_v54  ;;  %3656 = vmatprep.subr.mxu1 %v4134_v54 }
 0x495   : > { %v3846_v35 = vpop.eup %3845 }
 0x496   : > { %3649 = vmatmul.mubr.msk.f32.vlgmr.msra.gmra.mxu1 %vm1311_vm7, %v3846_v35  ;;  %v2121_v53 = vsel %vm1311_vm7, %v3846_v35, 0.0 }
 0x497   : > { %3657 = vmatpush3.msra.mxu1 %v2297_v36  ;;  %3658 = vmatprep.mubr.msk.f32.mxu1 %vm4135_vm6, %v4134_v54 }
 0x498   : > { %3666 = vmatprep.subr.mxu1 %v4134_v54 }
 0x4b4   : > { %v4657_v37 = vpop.xlane.xlu1 %2282 }
 0x4b5   : > { %v2287_v58 = vsub.f32 %v2280_v9, %v4657_v37 }
 0x4b7   : > { %v2288_v38 = vmul.f32 1.442695, %v2287_v58 }
 0x4b8   : > { %v4660_v39 = vpop.xlane.xlu1 %2629  ;;  %v4662_v40 = vpop.xlane.xlu0 %2456 }
 0x4b9   : > { %v2634_v41 = vsub.f32 %v4612_v11, %v4660_v39  ;;  %3847 = vpow2.f32 %v2288_v38  ;;  %v2461_v42 = vsub.f32 %v4614_v12, %v4662_v40 }
 0x4bb   : > { %v2635_v43 = vmul.f32 1.442695, %v2634_v41  ;;  %v2462_v44 = vmul.f32 1.442695, %v2461_v42  ;;  %v2284_v42 = vsub.f32 -inf, %v4657_v37 }
 0x4bc   : > { %v2470_v46 = vpop.permute.xlu0 %2469  ;;  %v2643_v51 = vpop.permute.xlu1 %2642 }
 0x4bd   : > { %3849 = vpow2.f32 %v2635_v43  ;;  %v2285_v43 = vmul.f32 1.442695, %v2284_v42 }
 0x4be   : > { %3851 = vpow2.f32 %v2462_v44  ;;  %v2458_v44 = vsub.f32 -inf, %v4662_v40 }
 0x4bf   : > { %3853 = vpow2.f32 %v1570_v60  ;;  %v2738_v60 = vld [vmem:[%s4472_s0 + $0x10] sm:$0xff] }
 0x4c0   : > { %3855 = vpow2.f32 %v1744_v62  ;;  %3683 = vmatprep.subr.mxu0 %v2738_v60 }
 0x4c1   : > { %3684 = vmatpush3.msra.mxu0 %v2738_v60  ;;  %v2989_v60 = vld [vmem:[%s4470_s12 + $0x38] sm:$0xff] }
 0x4c6   : > { %v3848_v45 = vpop.eup %3847 }
 0x4c7   : > { %3659 = vmatmul.mubr.msk.f32.vlgmr.msra.gmra.mxu1 %vm1311_vm7, %v3848_v45  ;;  %v2291_v47 = vsel %vm1311_vm7, %v3848_v45, 0.0  ;;  %v2631_v45 = vsub.f32 -inf, %v4660_v39 }
 0x4c8   : > { %3667 = vmatpush3.msra.mxu1 %v2470_v46  ;;  %2292 = vadd.xlane.f32.xlu0 %v2291_v47  ;;  %v2459_v46 = vmul.f32 1.442695, %v2458_v44 }
 0x4c9   : > { %3668 = vmatprep.mubr.msk.f32.mxu1 %vm4135_vm6, %v4134_v54  ;;  %3676 = vmatprep.subr.mxu1 %v4134_v54 }
 0x4ca   : > { %v3850_v48 = vpop.eup %3849 }
 0x4cb   : > { %v2638_v49 = vsel %vm1311_vm7, %v3850_v48, 0.0  ;;  %v3852_v50 = vpop.eup %3851 }
 0x4cc   : > { %2639 = vadd.xlane.f32.xlu1 %v2638_v49  ;;  %3669 = vmatmul.mubr.msk.f32.vlgmr.msra.gmra.mxu1 %vm1311_vm7, %v3852_v50  ;;  %v2465_v52 = vsel %vm1311_vm7, %v3852_v50, 0.0  ;;  %v3854_v1 = vpop.eup %3853  ;;  %v2632_v49 = vmul.f32 1.442695, %v2631_v45 }
 0x4cd   : > { %3677 = vmatpush3.msra.mxu1 %v2643_v51  ;;  %2466 = vadd.xlane.f32.xlu0 %v2465_v52  ;;  %v1575_v7 = vmul.f32 0.0, %v3854_v1  ;;  %v3856_v4 = vpop.eup %3855 }
 0x4ce   : > { %3678 = vmatprep.mubr.msk.f32.mxu1 %vm4135_vm6, %v4134_v54  ;;  %v1916_v54 = vsub.f32 -inf, %v4630_v20  ;;  %v1749_v11 = vmul.f32 0.0, %v3856_v4 }
 0x4d0   : > { %2122 = vadd.xlane.f32.xlu1 %v2121_v53  ;;  %3679 = vmatmul.mubr.msk.f32.vlgmr.msra.gmra.mxu1 %vm1311_vm7, %v3850_v48  ;;  %v1917_v0 = vmul.f32 1.442695, %v1916_v54  ;;  %v2737_v54 = vld [vmem:[%s4472_s0 + $0x8] sm:$0xff] }
 0x4d1   : > { %1407 = vadd.xlane.f32.xlu0 %v1406_v55  ;;  %3685 = vmatprep.subr.mxu0 %v2737_v54 }
 0x4d2   : > { %3857 = vpow2.f32 %v1917_v0  ;;  %v2736_v0 = vld [vmem:[%s4472_s0] sm:$0xff]  ;;  %3686 = vmatpush3.msra.mxu0 %v2737_v54  ;;  %v2986_v54 = vld [vmem:[%s4470_s12 + $0x20] sm:$0xff] }
 0x4d3   : > { %3687 = vmatprep.subr.mxu0 %v2736_v0 }
 0x4d4   : > { %3688 = vmatpush3.msra.mxu0 %v2736_v0 }
 0x4d5   : > { %3703 = vmatprep.subr.mxu0 %v2989_v60 }
 0x4d7   : > { %v4682_v56 = vpop.f32.mrf.mxu1 }
 0x4d9   : > { %v3610_v57 = vpop.f32.mrf.mxu1 }
 0x4df   : > { %v3858_v12 = vpop.eup %3857 }
 0x4e0   : > { %v1922_v15 = vmul.f32 0.0, %v3858_v12 }
 0x514   : > { %v1578_v6 = vpop.xlane.xlu0 %1577 }
 0x515   : > { %v1579_v8 = vadd.f32 %v1578_v6, %v1575_v7 }
 0x517   : > { %3859 = vrcp.f32 %v1579_v8 }
 0x518   : > { %v1752_v9 = vpop.xlane.xlu1 %1751 }
 0x519   : > { %v1753_v5 = vadd.f32 %v1752_v9, %v1749_v11 }
 0x51b   : > { %3861 = vrcp.f32 %v1753_v5 }
 0x51c   : > { %v1925_v13 = vpop.xlane.xlu0 %1924  ;;  %3863 = vpow2.f32 %v2115_v14 }
 0x51d   : > { %v1926_v16 = vadd.f32 %v1925_v13, %v1922_v15 }
 0x51f   : > { %3865 = vrcp.f32 %v1926_v16 }
 0x524   : > { %v3860_v19 = vpop.eup %3859 }
 0x528   : > { %v3862_v23 = vpop.eup %3861 }
 0x529   : > { %v3864_v27 = vpop.eup %3863 }
 0x52a   : > { %v2120_v34 = vmul.f32 0.0, %v3864_v27 }
 0x52c   : > { %v3866_v30 = vpop.eup %3865 }
 0x54a   : > { %v1653_v17 = vpop.f32.mrf.mxu1 }
 0x54b   : > { %v1657_v18 = vadd.f32 %v1653_v17, %v1575_v7 }
 0x54c   : > { %v3620_v20 = vpop.f32.mrf.mxu1 }
 0x54d   : > { %v1659_v21 = vmul.f32 %v3860_v19, %v1657_v18  ;;  %v1399_v18 = vsub.f32 -inf, %v4598_v63 }
 0x54e   : > { %v1826_v22 = vpop.f32.mrf.mxu1 }
 0x54f   : > { %v1830_v24 = vadd.f32 %v1826_v22, %v1749_v11  ;;  %2007 = vrot.lane.b32.xlu0 %v1659_v21, %s4140_s17  ;;  %v1400_v19 = vmul.f32 1.442695, %v1399_v18  ;;  %v3475_v18 = vld [vmem:[%s957_s14] ss:$0 sm:$0xff] }
 0x550   : > { %v3630_v25 = vpop.f32.mrf.mxu1 }
 0x551   : > { %v1832_v26 = vmul.f32 %v3862_v23, %v1830_v24  ;;  %v2293_v51 = vpop.xlane.xlu0 %2292 }
 0x552   : > { %v1999_v28 = vpop.f32.mrf.mxu1 }
 0x553   : > { %v2003_v29 = vadd.f32 %v1999_v28, %v1922_v15  ;;  %2011 = vrot.lane.b32.xlu1 %v1832_v26, %s4141_s20 }
 0x554   : > { %v3640_v31 = vpop.f32.mrf.mxu1 }
 0x555   : > { %v2005_v32 = vmul.f32 %v3866_v30, %v2003_v29  ;;  %v2640_v33 = vpop.xlane.xlu1 %2639 }
 0x556   : > { %v2194_v35 = vpop.f32.mrf.mxu1  ;;  %v2467_v40 = vpop.xlane.xlu0 %2466 }
 0x557   : > { %v2198_v36 = vadd.f32 %v2194_v35, %v2120_v34  ;;  %2015 = vrot.lane.b32.xlu1 %v2005_v32, %s4142_s8 }
 0x558   : > { %v3650_v58 = vpop.f32.mrf.mxu1 }
 0x559   : > { %v2123_v38 = vpop.xlane.xlu1 %2122  ;;  %v3472_v58 = vld [vmem:[%s954_s26] ss:$0 sm:$0xff] }
 0x55a   : > { %v2124_v41 = vadd.f32 %v2123_v38, %v2120_v34  ;;  %v1408_v21 = vpop.xlane.xlu0 %1407 }
 0x55c   : > { %3867 = vrcp.f32 %v2124_v41 }
 0x55d   : > { %3869 = vpow2.f32 %v2285_v43 }
 0x55e   : > { %3871 = vpow2.f32 %v2459_v46 }
 0x55f   : > { %3873 = vpow2.f32 %v2632_v49 }
 0x569   : > { %v3868_v47 = vpop.eup %3867 }
 0x56a   : > { %v4694_v48 = vmul.f32 %v3868_v47, %v2198_v36  ;;  %v3870_v50 = vpop.eup %3869 }
 0x56b   : > { %v2290_v52 = vmul.f32 0.0, %v3870_v50  ;;  %v3872_v37 = vpop.eup %3871 }
 0x56c   : > { %v2464_v55 = vmul.f32 0.0, %v3872_v37  ;;  %v3874_v39 = vpop.eup %3873 }
 0x56d   : > { %v2294_v53 = vadd.f32 %v2293_v51, %v2290_v52  ;;  %v2637_v61 = vmul.f32 0.0, %v3874_v39  ;;  %v2890_v39 = vld [vmem:[%s4474_s6 + $0x10] sm:$0xff] }
 0x56e   : > { %v2468_v57 = vadd.f32 %v2467_v40, %v2464_v55 }
 0x56f   : > { %3875 = vrcp.f32 %v2294_v53  ;;  %v2641_v62 = vadd.f32 %v2640_v33, %v2637_v61 }
 0x570   : > { %3877 = vrcp.f32 %v2468_v57  ;;  %v2889_v57 = vld [vmem:[%s4474_s6 + $0x8] sm:$0xff] }
 0x571   : > { %3879 = vrcp.f32 %v2641_v62  ;;  %v2987_v62 = vld [vmem:[%s4470_s12 + $0x28] sm:$0xff] }
 0x572   : > { %3881 = vpow2.f32 %v1400_v19 }
 0x57c   : > { %v3876_v7 = vpop.eup %3875 }
 0x57d   : > { %v3878_v11 = vpop.eup %3877 }
 0x57e   : > { %v3880_v15 = vpop.eup %3879 }
 0x57f   : > { %v3882_v20 = vpop.eup %3881 }
 0x580   : > { %v1405_v22 = vmul.f32 0.0, %v3882_v20 }
 0x582   : > { %v1409_v24 = vadd.f32 %v1408_v21, %v1405_v22  ;;  %v1483_v25 = vadd.f32 %v4682_v56, %v1405_v22  ;;  %v3476_v21 = vld [vmem:[%s960_s10] ss:$0 sm:$0xff] }
 0x584   : > { %3883 = vrcp.f32 %v1409_v24 }
 0x587   : > { %v2368_v1 = vpop.f32.mrf.mxu1 }
 0x588   : > { %v2372_v6 = vadd.f32 %v2368_v1, %v2290_v52 }
 0x589   : > { %v3660_v4 = vpop.f32.mrf.mxu1 }
 0x58a   : > { %v2374_v8 = vmul.f32 %v3876_v7, %v2372_v6 }
 0x58c   : > { %2722 = vrot.lane.b32.xlu1 %v2374_v8, %s4140_s17  ;;  %v2541_v9 = vpop.f32.mrf.mxu1 }
 0x58d   : > { %v2545_v10 = vadd.f32 %v2541_v9, %v2464_v55  ;;  %v2891_v55 = vld [vmem:[%s4474_s6 + $0x18] sm:$0xff] }
 0x58e   : > { %v3670_v12 = vpop.f32.mrf.mxu1  ;;  %3692 = vmatprep.subr.mxu1 %v2891_v55 }
 0x58f   : > { %v2547_v5 = vmul.f32 %v3878_v11, %v2545_v10  ;;  %3693 = vmatpush3.msra.mxu1 %v2891_v55 }
 0x590   : > { %v2714_v13 = vpop.f32.mrf.mxu1  ;;  %3694 = vmatprep.subr.mxu1 %v2890_v39 }
 0x591   : > { %v2718_v14 = vadd.f32 %v2714_v13, %v2637_v61  ;;  %2726 = vrot.lane.b32.xlu0 %v2547_v5, %s4141_s20  ;;  %v3884_v23 = vpop.eup %3883  ;;  %3695 = vmatpush3.msra.mxu1 %v2890_v39  ;;  %v2988_v61 = vld [vmem:[%s4470_s12 + $0x30] sm:$0xff] }
 0x592   : > { %v3680_v16 = vpop.f32.mrf.mxu1  ;;  %v1485_v28 = vmul.f32 %v3884_v23, %v1483_v25  ;;  %3696 = vmatprep.subr.mxu1 %v2889_v57 }
 0x593   : > { %v2720_v17 = vmul.f32 %v3880_v15, %v2718_v14  ;;  %3697 = vmatpush3.msra.mxu1 %v2889_v57 }
 0x594   : > { %3698 = vmatprep.subr.mxu1 %v2888_v59 }
 0x595   : > { %2730 = vrot.lane.b32.xlu1 %v2720_v17, %s4142_s8  ;;  %3699 = vmatpush3.msra.mxu1 %v2888_v59 }
 0x5c1   : > { %v2008_v26 = vpop.permute.xlu0 %2007 }
 0x5c2   : > { %v2018_v29 = vsel %vm1311_vm7, %v1485_v28, %v2008_v26  ;;  %v2985_v28 = vld [vmem:[%s4470_s12 + $0x18] sm:$0xff] }
 0x5c5   : > { %v2012_v27 = vpop.permute.xlu1 %2011 }
 0x5c6   : > { %v2020_v30 = vsel %vm2019_vm10, %v2018_v29, %v2012_v27  ;;  %v2984_v29 = vld [vmem:[%s4470_s12 + $0x10] sm:$0xff] }
 0x5c9   : > { %v2016_v63 = vpop.permute.xlu1 %2015 }
 0x5ca   : > { %v2022_v31 = vsel %vm2021_vm11, %v2020_v30, %v2016_v63  ;;  %v2983_v30 = vld [vmem:[%s4470_s12 + $0x8] sm:$0xff]  ;;  %v2982_v63 = vld [vmem:[%s4470_s12] sm:$0xff] }
 0x5cb   : > { %3689 = vmatprep.mubr.msk.f32.mxu0 %vm986_vm1, %v2022_v31  ;;  %v3477_v31 = vld [vmem:[%s963_s29] ss:$0 sm:$0xff]  ;;  %s4909_s29 = sld [smem:[#allocation38_spill]] (!%p3483_p13) }
 0x5fe   : > { %v2723_v32 = vpop.permute.xlu1 %2722 }
 0x5ff   : > { %v2733_v34 = vsel %vm1311_vm7, %v4694_v48, %v2723_v32 }
 0x603   : > { %v2727_v33 = vpop.permute.xlu0 %2726 }
 0x604   : > { %v2734_v35 = vsel %vm2019_vm10, %v2733_v34, %v2727_v33 }
 0x607   : > { %v2731_v56 = vpop.permute.xlu1 %2730 }
 0x608   : > { %v2735_v36 = vsel %vm2021_vm11, %v2734_v35, %v2731_v56 }
 0x609   : > { %3690 = vmatmul.mubr.msk.f32.vlgmr.msra.gmra.mxu0 %vm986_vm1, %v2735_v36 }
 0x60a   : > { %3704 = vmatpush3.msra.mxu0 %v2989_v60 }
 0x60b   : > { %3705 = vmatprep.subr.mxu0 %v2988_v61 }
 0x60c   : > { %3706 = vmatpush3.msra.mxu0 %v2988_v61 }
 0x60d   : > { %3707 = vmatprep.subr.mxu0 %v2987_v62 }
 0x60e   : > { %3708 = vmatpush3.msra.mxu0 %v2987_v62 }
 0x60f   : > { %3709 = vmatprep.subr.mxu0 %v2986_v54 }
 0x610   : > { %3710 = vmatpush3.msra.mxu0 %v2986_v54 }
 0x611   : > { %3711 = vmatprep.subr.mxu0 %v2985_v28 }
 0x612   : > { %3712 = vmatpush3.msra.mxu0 %v2985_v28 }
 0x613   : > { %3713 = vmatprep.subr.mxu0 %v2984_v29 }
 0x614   : > { %3714 = vmatpush3.msra.mxu0 %v2984_v29 }
 0x615   : > { %3715 = vmatprep.subr.mxu0 %v2983_v30 }
 0x616   : > { %3716 = vmatpush3.msra.mxu0 %v2983_v30 }
 0x617   : > { %3717 = vmatprep.subr.mxu0 %v2982_v63 }
 0x618   : > { %3718 = vmatpush3.msra.mxu0 %v2982_v63 }
 0x6c9   : > { %v3691_v38 = vpop.f32.mrf.mxu0 }
 0x6ca   : > { %v2825_v41 = vadd.f32 %v3691_v38, %v3472_v58  ;;  %v3482_v38 = vld [vmem:[%s971_s19] ss:$0 sm:$0xff] }
 0x6cb   : > { %v2819_v42 = vpop.f32.mrf.mxu0 }
 0x6cc   : > { %v4716_v43 = vadd.f32 %v2825_v41, %v4479_v3  ;;  %v2820_v44 = vadd.f32 %v3472_v58, %v2819_v42 }
 0x6ce   : > { %v4719_v45 = vadd.f32 %v2820_v44, %v4477_v2  ;;  %v2835_v46 = vsel %vm986_vm1, %v4716_v43, 0.0 }
 0x6cf   : > { %2836 = vadd.xlane.f32.xlu1 %v2835_v46 }
 0x6d0   : > { %v2832_v47 = vsel %vm986_vm1, %v4719_v45, 0.0 }
 0x6d1   : > { %2833 = vadd.xlane.f32.xlu0 %v2832_v47 }
 0x758   : > { %v2837_v48 = vpop.xlane.xlu1 %2836 }
 0x759   : > { %v2839_v49 = vmul.f32 0.03125, %v2837_v48 }
 0x75a   : > { %v2834_v50 = vpop.xlane.xlu0 %2833 }
 0x75b   : > { %v2838_v3 = vmul.f32 0.03125, %v2834_v50  ;;  %v2841_v51 = vsub.f32 %v4716_v43, %v2839_v49 }
 0x75d   : > { %v2840_v2 = vsub.f32 %v4719_v45, %v2838_v3  ;;  %v2843_v37 = vmul.f32 %v2841_v51, %v2841_v51  ;;  %v2859_v24 = vmul.f32 %v3475_v18, %v2841_v51 }
 0x75f   : > { %v2842_v52 = vmul.f32 %v2840_v2, %v2840_v2  ;;  %v2847_v40 = vsel %vm986_vm1, %v2843_v37, 0.0  ;;  %v2858_v19 = vmul.f32 %v3475_v18, %v2840_v2 }
 0x761   : > { %v2844_v53 = vsel %vm986_vm1, %v2842_v52, 0.0 }
 0x762   : > { %2845 = vadd.xlane.f32.xlu0 %v2844_v53 }
 0x766   : > { %2848 = vadd.xlane.f32.xlu0 %v2847_v40 }
 0x7eb   : > { %v2846_v0 = vpop.xlane.xlu0 %2845 }
 0x7ec   : > { %v2850_v1 = vmul.f32 0.032258064, %v2846_v0 }
 0x7ee   : > { %3885 = vrsqrt.f32 %v2850_v1  ;;  %vm2862_vm12 = vcmp.eq.f32.partialorder %v2850_v1, inf  ;;  %v2865_v9 = vand.u32 2147483648, %v2850_v1  ;;  %vm2864_vm13 = vcmp.eq.f32.partialorder %v2850_v1, 0.0 }
 0x7ef   : > { %v2849_v6 = vpop.xlane.xlu0 %2848 }
 0x7f0   : > { %v2851_v7 = vmul.f32 0.032258064, %v2849_v6 }
 0x7f2   : > { %3887 = vrsqrt.f32 %v2851_v7  ;;  %vm2869_vm14 = vcmp.eq.f32.partialorder %v2851_v7, inf  ;;  %v2872_v14 = vand.u32 2147483648, %v2851_v7  ;;  %vm2871_vm15 = vcmp.eq.f32.partialorder %v2851_v7, 0.0 }
 0x7fb   : > { %v3886_v4 = vpop.eup %3885 }
 0x7fc   : > { %v2861_v8 = vmul.f32 %v3886_v4, %v2850_v1 }
 0x7fe   : > { %v2863_v10 = vsel %vm2862_vm12, %v2850_v1, %v2861_v8 }
 0x7ff   : > { %v3888_v11 = vpop.eup %3887  ;;  %v2866_v12 = vsel %vm2864_vm13, %v2865_v9, %v2863_v10 }
 0x800   : > { %v2874_v5 = vadd.f32 1e-06, %v2866_v12  ;;  %v2868_v13 = vmul.f32 %v3888_v11, %v2851_v7 }
 0x802   : > { %3889 = vrcp.f32 %v2874_v5  ;;  %v2870_v15 = vsel %vm2869_vm14, %v2851_v7, %v2868_v13 }
 0x803   : > { %v2873_v16 = vsel %vm2871_vm15, %v2872_v14, %v2870_v15 }
 0x804   : > { %v2875_v17 = vadd.f32 1e-06, %v2873_v16 }
 0x806   : > { %3891 = vrcp.f32 %v2875_v17 }
 0x80f   : > { %v3890_v20 = vpop.eup %3889 }
 0x810   : > { %v2877_v22 = vmul.f32 %v3890_v20, %v2858_v19 }
 0x812   : > { %v2886_v23 = vadd.f32 %v3476_v21, %v2877_v22 }
 0x813   : > { %v3892_v25 = vpop.eup %3891 }
 0x814   : > { %v2879_v26 = vmul.f32 %v3892_v25, %v2859_v24  ;;  %3700 = vmatprep.mubr.msk.f32.mxu1 %vm986_vm1, %v2886_v23 }
 0x816   : > { %v2887_v27 = vadd.f32 %v3476_v21, %v2879_v26 }
 0x818   : > { %3701 = vmatmul.mubr.msk.f32.vlgmr.msra.gmra.mxu1 %vm986_vm1, %v2887_v27 }
 0x8d8   : > { %v3702_v32 = vpop.f32.mrf.mxu1 }
 0x8d9   : > { %v2977_v33 = vadd.f32 %v3702_v32, %v3477_v31 }
 0x8da   : > { %v2971_v34 = vpop.f32.mrf.mxu1 }
 0x8db   : > { %v2972_v35 = vadd.f32 %v3477_v31, %v2971_v34  ;;  %v2981_v36 = vmax.f32 %v2977_v33, 0.0 }
 0x8dd   : > { %v2980_v56 = vmax.f32 %v2972_v35, 0.0 }
 0x8df   : > { %3719 = vmatprep.mubr.msk.f32.mxu0 %vm2990_vm0, %v2980_v56 }
 0x8e0   : > { %3720 = vmatmul.mubr.msk.f32.vlgmr.msra.gmra.mxu0 %vm2990_vm0, %v2981_v36 }
 0x9a0   : > { %v3721_v58 = vpop.f32.mrf.mxu0 }
 0x9a1   : > { %v3073_v41 = vadd.f32 %v3721_v58, %v4716_v43 }
 0x9a2   : > { %v3063_v42 = vpop.f32.mrf.mxu0 }
 0x9a3   : > { %v3082_v44 = vadd.f32 %v3482_v38, %v3073_v41  ;;  %v3072_v46 = vadd.f32 %v3063_v42, %v4719_v45  ;;  %3088 = sbr.rel (%p3483_p13) target bundleno = 2801 (0xaf1), region = 128 }
 0x9a5   : > { %3084 = vst.msk [vmem:[#allocation10 + $0x8] sm:$0xff] %vm986_vm1, %v3082_v44  ;;  %v3081_v47 = vadd.f32 %v3482_v38, %v3072_v46 }
 0x9a7   : > { %3083 = vst.msk [vmem:[#allocation10] sm:$0xff] %vm986_vm1, %v3081_v47 }
 0x9a8   : > { %v3091_v48 = vsel %vm986_vm1, %v3081_v47, 0.0  ;;  %v3094_v49 = vsel %vm986_vm1, %v3082_v44, 0.0  ;;  %v3484_v11 = vld [vmem:[%s4909_s29] ss:$0 sm:$0xff] }
 0x9a9   : > { %3092 = vadd.xlane.f32.xlu0 %v3091_v48  ;;  %v3485_v13 = vld [vmem:[%s4910_s4] ss:$0 sm:$0xff] }
 0x9ad   : > { %3095 = vadd.xlane.f32.xlu0 %v3094_v49 }
 0xa32   : > { %v3093_v50 = vpop.xlane.xlu0 %3092 }
 0xa33   : > { %v3097_v43 = vmul.f32 0.03125, %v3093_v50 }
 0xa35   : > { %v3099_v3 = vsub.f32 %v3081_v47, %v3097_v43 }
 0xa36   : > { %v3096_v51 = vpop.xlane.xlu0 %3095 }
 0xa37   : > { %v3098_v2 = vmul.f32 0.03125, %v3096_v51  ;;  %v3101_v45 = vmul.f32 %v3099_v3, %v3099_v3  ;;  %v3117_v12 = vmul.f32 %v3484_v11, %v3099_v3 }
 0xa39   : > { %v3100_v52 = vsub.f32 %v3082_v44, %v3098_v2  ;;  %v3103_v53 = vsel %vm986_vm1, %v3101_v45, 0.0 }
 0xa3a   : > { %3104 = vadd.xlane.f32.xlu1 %v3103_v53 }
 0xa3b   : > { %v3102_v37 = vmul.f32 %v3100_v52, %v3100_v52  ;;  %v3118_v15 = vmul.f32 %v3484_v11, %v3100_v52 }
 0xa3d   : > { %v3106_v40 = vsel %vm986_vm1, %v3102_v37, 0.0 }
 0xa3e   : > { %3107 = vadd.xlane.f32.xlu1 %v3106_v40 }
 0xac3   : > { %v3105_v55 = vpop.xlane.xlu1 %3104 }
 0xac4   : > { %v3109_v39 = vmul.f32 0.032258064, %v3105_v55 }
 0xac6   : > { %3893 = vrsqrt.f32 %v3109_v39  ;;  %vm3121_vm2 = vcmp.eq.f32.partialorder %v3109_v39, inf  ;;  %v3124_v62 = vand.u32 2147483648, %v3109_v39  ;;  %vm3123_vm3 = vcmp.eq.f32.partialorder %v3109_v39, 0.0 }
 0xac7   : > { %v3108_v57 = vpop.xlane.xlu1 %3107 }
 0xac8   : > { %v3110_v59 = vmul.f32 0.032258064, %v3108_v57 }
 0xaca   : > { %3895 = vrsqrt.f32 %v3110_v59  ;;  %vm3128_vm4 = vcmp.eq.f32.partialorder %v3110_v59, inf  ;;  %v3131_v4 = vand.u32 2147483648, %v3110_v59  ;;  %vm3130_vm5 = vcmp.eq.f32.partialorder %v3110_v59, 0.0 }
 0xad3   : > { %v3894_v60 = vpop.eup %3893 }
 0xad4   : > { %v3120_v61 = vmul.f32 %v3894_v60, %v3109_v39 }
 0xad6   : > { %v3122_v54 = vsel %vm3121_vm2, %v3109_v39, %v3120_v61 }
 0xad7   : > { %v3896_v0 = vpop.eup %3895  ;;  %v3125_v1 = vsel %vm3123_vm3, %v3124_v62, %v3122_v54 }
 0xad8   : > { %v3133_v6 = vadd.f32 1e-06, %v3125_v1  ;;  %v3127_v7 = vmul.f32 %v3896_v0, %v3110_v59 }
 0xada   : > { %3897 = vrcp.f32 %v3133_v6  ;;  %v3129_v8 = vsel %vm3128_vm4, %v3110_v59, %v3127_v7 }
 0xadb   : > { %v3132_v9 = vsel %vm3130_vm5, %v3131_v4, %v3129_v8 }
 0xadc   : > { %v3134_v10 = vadd.f32 1e-06, %v3132_v9 }
 0xade   : > { %3899 = vrcp.f32 %v3134_v10 }
 0xae7   : > { %v3898_v5 = vpop.eup %3897 }
 0xae8   : > { %v3136_v14 = vmul.f32 %v3898_v5, %v3117_v12 }
 0xaea   : > { %v3145_v16 = vadd.f32 %v3485_v13, %v3136_v14 }
 0xaeb   : > { %v3900_v17 = vpop.eup %3899 }
 0xaec   : > { %3147 = vst.msk [vmem:[#allocation10] sm:$0xff] %vm986_vm1, %v3145_v16  ;;  %v3138_v18 = vmul.f32 %v3900_v17, %v3118_v15 }
 0xaee   : > { %v3146_v19 = vadd.f32 %v3485_v13, %v3138_v18 }
 0xaf0   : > { %3148 = vst.msk [vmem:[#allocation10 + $0x8] sm:$0xff] %vm986_vm1, %v3146_v19 }
 0xaf1 PF: > { %s4911_s9 = sld [smem:[#allocation19_spill]]  ;;  %s4143_s13 = smov [#allocation10]  }
 0xaf2   : > { %s3158_s28 = sshll.u32 %s4143_s13, 4  ;;  %s3159_s28 = int_to_ptr.vmem [resolvable:$true] %s3158_s28 }
 0xaf3   : > { %s4037_s21 = scalar_lea.vmem %s3159_s28, 256  ;;  %p4044_p3 = scmp.lt.s32.totalorder %s3159_s28, %s3159_s28 }
 0xaf4   : > { %p4038_p8 = scmp.ne.s32.totalorder %s3159_s28, %s4037_s21  ;;  %p4045_p9 = scmp.lt.s32.totalorder %s4037_s21, %s4037_s21 }
 0xaf6   : > { %p4046_p6 = por %p4045_p9, %p4044_p3 }
 0xaf7   : > { %p3762_p1 = scmp.eq.s32.totalorder %s4911_s9, 1 }
 0xaf9   : > { %p4039_p12 = pnand %p4038_p8, %p3762_p1 }
 0xafb   : > { %p4040_p2 = pneg %p4039_p12 }
 0xafd   : > { %p4047_p7 = pnand %p4046_p6, %p4040_p2 }
 0xaff   : > { %4050 = shalt.err (!%p4047_p7)
}
 0xb00   : > { %s4144_s1 = smov 128   ;;  %s4912_s0 = sld [smem:[#allocation40_spill]] }
 0xb06   : > { %3737 = dma.vmem_to_hbm [thread:$0]  (%p3762_p1), %s3159_s28, 256, %s4912_s0, [#allocation4], %s4144_s1, %s4144_s1, %s4140_s17  }
 0xb07   : > { %4098 = dma.done.wait (%p3762_p1), [#allocation4], 256  }
 0xb08   : > { %4100 = vsyncadd (%p3762_p1), [#allocation4], 4294967040 }
 0xb09 PF: > { %s4913_s22 = sld [smem:[#allocation18_spill]] }
 0xb0a   : > { %s4914_s1 = sld [smem:[#allocation15_spill]] }
 0xb0b   : > { %s4916_s23 = sld [smem:[#allocation21_spill]] }
 0xb0c   : > { %s4917_s24 = sld [smem:[#allocation17_spill]] }
 0xb0d   : > { %s4918_s2 = sld [smem:[#allocation20_spill]] }
 0xb0f   : > { %s33_s25 = sadd.s32 1, %s4913_s22   ;;  %s4915_s22 = sld [smem:[#allocation16_spill]] }
 0xb10   : > { %p30_p0 = scmp.ge.s32.totalorder %s33_s25, 4  }
 0xb12   :  { %32 = sbr.rel (!%p30_p0) target bundleno = 25 (0x19), region = 217 }
 0xb17   :  { %3174 = vsyncpa [#allocation3], 1 }
 0xb18   :  { %3176 = vsyncpa [#allocation3 + $0x1], 1 }
 0xb19   :  { %3177 = vsyncpa [#allocation6], 1 }
 0xb1a   :  { %3178 = vsyncpa [#allocation4], 1 }
 0xb1b   :  { %3180 = vsyncpa [#allocation4 + $0x1], 1 }

</bundles_post_ra>
